<compile_context>
chip_gen: v7x
topology: tpu7x:2x2x1
jax: 0.10.0
libtpu: 0.0.40
codegen_flags: <defaults>
</compile_context>

<pallas_src>
import functools

import jax
import jax.numpy as jnp
from jax.experimental import pallas as pl
from jax.experimental.pallas import tpu as pltpu


def _round_up(x, m):
    return (x + m - 1) // m * m


def _make_lstm_kernel(t_valid, t_tile, unroll):
    """Builds the recurrence kernel for one (batch tile, time tile) grid step.

    gx_ref : (Tt, Bt, 4*Hp) bf16  precomputed x @ Wih^T + bias, gate-blocks lane-aligned
    whh_ref: (Hp, 4*Hp)     bf16  recurrent weights, gate-blocks lane-aligned (resident)
    h_ref / c_ref: (Bt, Hp) f32   hidden / cell state; persist across the time axis
                                   (same output block for every t) and are the outputs.
    """
    needs_mask = (t_valid % t_tile) != 0

    def kernel(gx_ref, whh_ref, h_ref, c_ref):
        t_blk = pl.program_id(1)

        @pl.when(t_blk == 0)
        def _():
            h_ref[...] = jnp.zeros_like(h_ref)
            c_ref[...] = jnp.zeros_like(c_ref)

        Hp = whh_ref.shape[0]
        whh = whh_ref[...]  # stays resident across the inner loop

        def step(t, carry):
            h, c = carry
            # Recurrent projection on the MXU: bf16 operands, f32 accumulation.
            gates = gx_ref[t].astype(jnp.float32) + jnp.dot(
                h.astype(jnp.bfloat16), whh, preferred_element_type=jnp.float32
            )
            # Each gate block starts at a multiple of Hp (Hp % 128 == 0) -> lane-aligned.
            i_g = jax.nn.sigmoid(gates[:, 0 * Hp:1 * Hp])
            f_g = jax.nn.sigmoid(gates[:, 1 * Hp:2 * Hp])
            g_g = jnp.tanh(gates[:, 2 * Hp:3 * Hp])
            o_g = jax.nn.sigmoid(gates[:, 3 * Hp:4 * Hp])
            c_new = f_g * c + i_g * g_g
            h_new = o_g * jnp.tanh(c_new)
            if needs_mask:
                # Last time tile may contain padded timesteps: keep state unchanged.
                valid = (t_blk * t_tile + t) < t_valid
                h_new = jnp.where(valid, h_new, h)
                c_new = jnp.where(valid, c_new, c)
            return h_new, c_new

        h_fin, c_fin = jax.lax.fori_loop(
            0, t_tile, step, (h_ref[...], c_ref[...]), unroll=unroll
        )
        h_ref[...] = h_fin
        c_ref[...] = c_fin

    return kernel


def encoder_forward(input_tokens, emb_table, w_ih, w_hh, b_ih, b_hh):
    """
    input_tokens: (B, T) int32 token ids
    emb_table:    (V, H) float32
    w_ih, w_hh:   (4H, H) float32 (PyTorch nn.LSTM layout, gate order [i,f,g,o])
    b_ih, b_hh:   (4H,)   float32
    Returns (h_n, c_n), each (1, B, H) — matching PyTorch nn.LSTM hidden output.
    """
    B, T = input_tokens.shape
    H = emb_table.shape[1]

    # ---- tiling ---------------------------------------------------------------
    Hp = _round_up(max(H, 128), 128)          # lane-aligned hidden
    Bp0 = _round_up(max(B, 8), 8)             # sublane-aligned batch
    if Bp0 <= 256:
        Bt, Bp = Bp0, Bp0                     # single batch tile
    else:
        Bt = 256                              # batch tiles -> parallel grid axis
        Bp = _round_up(Bp0, Bt)

    # Time tile sized so one gx buffer (bf16) is ~<=4 MiB (x2 for double buffering
    # keeps us comfortably inside v7x's 64 MiB / default scoped limits).
    bytes_per_step = Bt * 4 * Hp * 2
    Tt = max(1, (4 * 1024 * 1024) // bytes_per_step)
    Tt = min(Tt, T)
    Tp = _round_up(T, Tt)

    # ---- glue (plain JAX): embedding + hoisted input projection ---------------
    # Embed directly time-major; pad batch only (gx is produced in final layout).
    emb_t = jnp.take(emb_table, jnp.transpose(input_tokens), axis=0)   # (T, B, H)
    emb_t = jnp.pad(emb_t, ((0, 0), (0, Bp - B), (0, 0)))              # (T, Bp, H)

    # Gate-block + lane-pad the (small) weights/bias so the einsum emits the
    # final (T, Bp, 4*Hp) layout directly — no reshape/pad/transpose of the slab.
    wih_b = jnp.transpose(w_ih).reshape(H, 4, H)                       # (H, 4, H)
    wih_b = jnp.pad(wih_b, ((0, 0), (0, 0), (0, Hp - H))).reshape(H, 4 * Hp)
    bias_b = (b_ih + b_hh).reshape(4, H)
    bias_b = jnp.pad(bias_b, ((0, 0), (0, Hp - H))).reshape(4 * Hp)

    gx = jnp.einsum(
        "tbh,hg->tbg", emb_t, wih_b, preferred_element_type=jnp.float32
    ) + bias_b                                                          # (T, Bp, 4Hp)
    gx = gx.astype(jnp.bfloat16)                                        # halve DMA bytes
    if Tp != T:
        gx = jnp.pad(gx, ((0, Tp - T), (0, 0), (0, 0)))

    # Recurrent weights, gate-blocked/padded the same way, bf16 for the MXU.
    whh = jnp.transpose(w_hh).reshape(H, 4, H)
    whh = jnp.pad(whh, ((0, Hp - H), (0, 0), (0, Hp - H)))
    whh = whh.reshape(Hp, 4 * Hp).astype(jnp.bfloat16)                  # (Hp, 4Hp)

    nb = Bp // Bt
    nt = Tp // Tt

    # ---- explicit VMEM budget --------------------------------------------------
    gx_tile_bytes = Tt * Bt * 4 * Hp * 2
    whh_bytes = Hp * 4 * Hp * 2
    out_bytes = 2 * Bt * Hp * 4
    needed = 2 * gx_tile_bytes + 2 * whh_bytes + 2 * out_bytes
    vmem_limit = int(min(64 * 1024 * 1024, max(32 * 1024 * 1024, 2 * needed)))

    kernel = _make_lstm_kernel(T, Tt, unroll=min(8, Tt))

    grid_spec = pltpu.PrefetchScalarGridSpec(
        num_scalar_prefetch=0,
        grid=(nb, nt),   # batch tiles (parallel) x time tiles (serial recurrence)
        in_specs=[
            pl.BlockSpec((Tt, Bt, 4 * Hp), lambda b, t: (t, b, 0)),  # streamed gx
            pl.BlockSpec((Hp, 4 * Hp), lambda b, t: (0, 0)),         # Whh^T resident
        ],
        out_specs=[
            pl.BlockSpec((Bt, Hp), lambda b, t: (b, 0)),             # h_n (accumulator)
            pl.BlockSpec((Bt, Hp), lambda b, t: (b, 0)),             # c_n (accumulator)
        ],
    )

    h_n, c_n = pl.pallas_call(
        kernel,
        out_shape=(
            jax.ShapeDtypeStruct((Bp, Hp), jnp.float32),
            jax.ShapeDtypeStruct((Bp, Hp), jnp.float32),
        ),
        grid_spec=grid_spec,
        compiler_params=pltpu.CompilerParams(
            dimension_semantics=("parallel", "arbitrary"),
            vmem_limit_bytes=vmem_limit,
        ),
    )(gx, whh)

    # Slice off padding; PyTorch returns (num_layers, B, H) for both h_n and c_n.
    h_n = h_n[:B, :H][None, :, :]
    c_n = c_n[:B, :H][None, :, :]
    return h_n, c_n


def _reference_encoder(input_tokens, emb_table, w_ih, w_hh, b_ih, b_hh):
    """Pure-JAX f32 reference of the same forward (embedding + 1-layer LSTM)."""
    embedded = jnp.take(emb_table, input_tokens, axis=0)       # (B, T, H)
    B, T, H = embedded.shape

    def step(carry, x_t):
        h, c = carry
        gates = x_t @ w_ih.T + b_ih + h @ w_hh.T + b_hh
        i_g, f_g, g_g, o_g = jnp.split(gates, 4, axis=-1)
        i_g = jax.nn.sigmoid(i_g)
        f_g = jax.nn.sigmoid(f_g)
        g_g = jnp.tanh(g_g)
        o_g = jax.nn.sigmoid(o_g)
        c = f_g * c + i_g * g_g
        h = o_g * jnp.tanh(c)
        return (h, c), None

    init = (jnp.zeros((B, H), jnp.float32), jnp.zeros((B, H), jnp.float32))
    (h, c), _ = jax.lax.scan(step, init, jnp.transpose(embedded, (1, 0, 2)))
    return h[None], c[None]


if __name__ == "__main__":
    # Small shapes consistent with the module's forward.
    B, T, H, V = 2, 8, 32, 16

    key = jax.random.PRNGKey(0)
    k_tok, k_emb, k_wih, k_whh, k_bih, k_bhh = jax.random.split(key, 6)

    input_tokens = jax.random.randint(k_tok, (B, T), 0, V, dtype=jnp.int32)

    # Deterministic parameter init (PyTorch-style uniform(-1/sqrt(H), 1/sqrt(H))).
    bound = 1.0 / jnp.sqrt(jnp.float32(H))
    emb_table = jax.random.normal(k_emb, (V, H), dtype=jnp.float32)
    w_ih = jax.random.uniform(k_wih, (4 * H, H), minval=-bound, maxval=bound, dtype=jnp.float32)
    w_hh = jax.random.uniform(k_whh, (4 * H, H), minval=-bound, maxval=bound, dtype=jnp.float32)
    b_ih = jax.random.uniform(k_bih, (4 * H,), minval=-bound, maxval=bound, dtype=jnp.float32)
    b_hh = jax.random.uniform(k_bhh, (4 * H,), minval=-bound, maxval=bound, dtype=jnp.float32)

    h_n, c_n = encoder_forward(input_tokens, emb_table, w_ih, w_hh, b_ih, b_hh)
    jax.block_until_ready((h_n, c_n))

    assert h_n.shape == (1, B, H) and c_n.shape == (1, B, H)

    # Correctness vs pure-JAX f32 reference (tolerance covers bf16 matmul operands).
    h_ref, c_ref = _reference_encoder(input_tokens, emb_table, w_ih, w_hh, b_ih, b_hh)
    jax.block_until_ready((h_ref, c_ref))
    assert jnp.max(jnp.abs(h_n - h_ref)) < 5e-2
    assert jnp.max(jnp.abs(c_n - c_ref)) < 5e-2

    print("KERNEL_OK")
</pallas_src>

<mosaic_0001>
module attributes {stable_mosaic.version = 11 : i64} {
  func.func @kernel(%arg0: i32, %arg1: i32, %arg2: memref<8x8x512xbf16, #tpu.memory_space<vmem>>, %arg3: memref<128x512xbf16, #tpu.memory_space<vmem>>, %arg4: memref<8x128xf32, #tpu.memory_space<vmem>>, %arg5: memref<8x128xf32, #tpu.memory_space<vmem>>) attributes {dimension_semantics = [#tpu.dimension_semantics<parallel>, #tpu.dimension_semantics<arbitrary>], iteration_bounds = array<i64: 1, 1>, scalar_prefetch = 0 : i64, scratch_operands = 0 : i64, tpu.core_type = #tpu.core_type<tc>, window_params = [{transform_indices = @transform_0, window_bounds = array<i64: 8, 8, 512>}, {pipeline_mode = #tpu.pipeline_mode<synchronous>, transform_indices = @transform_1, window_bounds = array<i64: 128, 512>}, {transform_indices = @transform_2, window_bounds = array<i64: 8, 128>}, {transform_indices = @transform_3, window_bounds = array<i64: 8, 128>}]} {
    %c0_i32 = arith.constant 0 : i32
    %0 = arith.cmpi eq, %arg1, %c0_i32 : i32
    %1 = arith.extui %0 : i1 to i32
    %c0_i32_0 = arith.constant 0 : i32
    %2 = arith.cmpi ne, %1, %c0_i32_0 : i32
    scf.if %2 {
      %cst_58 = arith.constant 0.000000e+00 : f32
      %264 = vector.broadcast %cst_58 : f32 to vector<8x128xf32>
      %c0_59 = arith.constant 0 : index
      %c0_60 = arith.constant 0 : index
      %265 = vector.load %arg4[%c0_59, %c0_60] : memref<8x128xf32, #tpu.memory_space<vmem>>, vector<8x128xf32>
      tpu.vector_store %arg4[%c0_59, %c0_60], %264 {strides = array<i32>} : memref<8x128xf32, #tpu.memory_space<vmem>>, vector<8x128xf32>,
      %cst_61 = arith.constant 0.000000e+00 : f32
      %266 = vector.broadcast %cst_61 : f32 to vector<8x128xf32>
      %c0_62 = arith.constant 0 : index
      %c0_63 = arith.constant 0 : index
      %267 = vector.load %arg5[%c0_62, %c0_63] : memref<8x128xf32, #tpu.memory_space<vmem>>, vector<8x128xf32>
      tpu.vector_store %arg5[%c0_62, %c0_63], %266 {strides = array<i32>} : memref<8x128xf32, #tpu.memory_space<vmem>>, vector<8x128xf32>,
    } else {
    }
    %c0 = arith.constant 0 : index
    %c0_1 = arith.constant 0 : index
    %3 = vector.load %arg3[%c0, %c0_1] : memref<128x512xbf16, #tpu.memory_space<vmem>>, vector<128x512xbf16>
    %c0_2 = arith.constant 0 : index
    %c0_3 = arith.constant 0 : index
    %4 = vector.load %arg4[%c0_2, %c0_3] : memref<8x128xf32, #tpu.memory_space<vmem>>, vector<8x128xf32>
    %c0_4 = arith.constant 0 : index
    %c0_5 = arith.constant 0 : index
    %5 = vector.load %arg5[%c0_4, %c0_5] : memref<8x128xf32, #tpu.memory_space<vmem>>, vector<8x128xf32>
    %c0_i32_6 = arith.constant 0 : i32
    %6 = arith.index_cast %c0_i32_6 : i32 to index
    %c0_7 = arith.constant 0 : index
    %c0_8 = arith.constant 0 : index
    %7 = vector.load %arg2[%6, %c0_7, %c0_8] : memref<8x8x512xbf16, #tpu.memory_space<vmem>>, vector<1x8x512xbf16>
    %8 = vector.shape_cast %7 : vector<1x8x512xbf16> to vector<8x512xbf16>
    %9 = arith.extf %8 : vector<8x512xbf16> to vector<8x512xf32>
    %10 = arith.truncf %4 : vector<8x128xf32> to vector<8x128xbf16>
    %cst = arith.constant dense<0.000000e+00> : vector<8x512xf32>
    %11 = tpu.matmul %10, %3, %cst {dimension_numbers = #tpu.dot_dimension_numbers<[1], [0], [0], [1], [0, 0, 1, 1], [], []>} : vector<8x128xbf16>, vector<128x512xbf16>, vector<8x512xf32> -> vector<8x512xf32>
    %12 = arith.addf %9, %11 : vector<8x512xf32>
    %13 = vector.extract_strided_slice %12 {offsets = [0, 0], sizes = [8, 128], strides = [1, 1]} : vector<8x512xf32> to vector<8x128xf32>
    %14 = arith.negf %13 : vector<8x128xf32>
    %15 = math.exp %14 : vector<8x128xf32>
    %cst_9 = arith.constant 1.000000e+00 : f32
    %16 = vector.broadcast %cst_9 : f32 to vector<8x128xf32>
    %17 = arith.addf %16, %15 : vector<8x128xf32>
    %18 = arith.divf %16, %17 : vector<8x128xf32>
    %19 = vector.extract_strided_slice %12 {offsets = [0, 128], sizes = [8, 128], strides = [1, 1]} : vector<8x512xf32> to vector<8x128xf32>
    %20 = arith.negf %19 : vector<8x128xf32>
    %21 = math.exp %20 : vector<8x128xf32>
    %cst_10 = arith.constant 1.000000e+00 : f32
    %22 = vector.broadcast %cst_10 : f32 to vector<8x128xf32>
    %23 = arith.addf %22, %21 : vector<8x128xf32>
    %24 = arith.divf %22, %23 : vector<8x128xf32>
    %25 = vector.extract_strided_slice %12 {offsets = [0, 256], sizes = [8, 128], strides = [1, 1]} : vector<8x512xf32> to vector<8x128xf32>
    %26 = math.tanh %25 : vector<8x128xf32>
    %27 = vector.extract_strided_slice %12 {offsets = [0, 384], sizes = [8, 128], strides = [1, 1]} : vector<8x512xf32> to vector<8x128xf32>
    %28 = arith.negf %27 : vector<8x128xf32>
    %29 = math.exp %28 : vector<8x128xf32>
    %cst_11 = arith.constant 1.000000e+00 : f32
    %30 = vector.broadcast %cst_11 : f32 to vector<8x128xf32>
    %31 = arith.addf %30, %29 : vector<8x128xf32>
    %32 = arith.divf %30, %31 : vector<8x128xf32>
    %33 = arith.mulf %24, %5 : vector<8x128xf32>
    %34 = arith.mulf %18, %26 : vector<8x128xf32>
    %35 = arith.addf %33, %34 : vector<8x128xf32>
    %36 = math.tanh %35 : vector<8x128xf32>
    %37 = arith.mulf %32, %36 : vector<8x128xf32>
    %c1_i32 = arith.constant 1 : i32
    %38 = arith.index_cast %c1_i32 : i32 to index
    %c0_12 = arith.constant 0 : index
    %c0_13 = arith.constant 0 : index
    %39 = vector.load %arg2[%38, %c0_12, %c0_13] : memref<8x8x512xbf16, #tpu.memory_space<vmem>>, vector<1x8x512xbf16>
    %40 = vector.shape_cast %39 : vector<1x8x512xbf16> to vector<8x512xbf16>
    %41 = arith.extf %40 : vector<8x512xbf16> to vector<8x512xf32>
    %42 = arith.truncf %37 : vector<8x128xf32> to vector<8x128xbf16>
    %cst_14 = arith.constant dense<0.000000e+00> : vector<8x512xf32>
    %43 = tpu.matmul %42, %3, %cst_14 {dimension_numbers = #tpu.dot_dimension_numbers<[1], [0], [0], [1], [0, 0, 1, 1], [], []>} : vector<8x128xbf16>, vector<128x512xbf16>, vector<8x512xf32> -> vector<8x512xf32>
    %44 = arith.addf %41, %43 : vector<8x512xf32>
    %45 = vector.extract_strided_slice %44 {offsets = [0, 0], sizes = [8, 128], strides = [1, 1]} : vector<8x512xf32> to vector<8x128xf32>
    %46 = arith.negf %45 : vector<8x128xf32>
    %47 = math.exp %46 : vector<8x128xf32>
    %cst_15 = arith.constant 1.000000e+00 : f32
    %48 = vector.broadcast %cst_15 : f32 to vector<8x128xf32>
    %49 = arith.addf %48, %47 : vector<8x128xf32>
    %50 = arith.divf %48, %49 : vector<8x128xf32>
    %51 = vector.extract_strided_slice %44 {offsets = [0, 128], sizes = [8, 128], strides = [1, 1]} : vector<8x512xf32> to vector<8x128xf32>
    %52 = arith.negf %51 : vector<8x128xf32>
    %53 = math.exp %52 : vector<8x128xf32>
    %cst_16 = arith.constant 1.000000e+00 : f32
    %54 = vector.broadcast %cst_16 : f32 to vector<8x128xf32>
    %55 = arith.addf %54, %53 : vector<8x128xf32>
    %56 = arith.divf %54, %55 : vector<8x128xf32>
    %57 = vector.extract_strided_slice %44 {offsets = [0, 256], sizes = [8, 128], strides = [1, 1]} : vector<8x512xf32> to vector<8x128xf32>
    %58 = math.tanh %57 : vector<8x128xf32>
    %59 = vector.extract_strided_slice %44 {offsets = [0, 384], sizes = [8, 128], strides = [1, 1]} : vector<8x512xf32> to vector<8x128xf32>
    %60 = arith.negf %59 : vector<8x128xf32>
    %61 = math.exp %60 : vector<8x128xf32>
    %cst_17 = arith.constant 1.000000e+00 : f32
    %62 = vector.broadcast %cst_17 : f32 to vector<8x128xf32>
    %63 = arith.addf %62, %61 : vector<8x128xf32>
    %64 = arith.divf %62, %63 : vector<8x128xf32>
    %65 = arith.mulf %56, %35 : vector<8x128xf32>
    %66 = arith.mulf %50, %58 : vector<8x128xf32>
    %67 = arith.addf %65, %66 : vector<8x128xf32>
    %68 = math.tanh %67 : vector<8x128xf32>
    %69 = arith.mulf %64, %68 : vector<8x128xf32>
    %c2_i32 = arith.constant 2 : i32
    %70 = arith.index_cast %c2_i32 : i32 to index
    %c0_18 = arith.constant 0 : index
    %c0_19 = arith.constant 0 : index
    %71 = vector.load %arg2[%70, %c0_18, %c0_19] : memref<8x8x512xbf16, #tpu.memory_space<vmem>>, vector<1x8x512xbf16>
    %72 = vector.shape_cast %71 : vector<1x8x512xbf16> to vector<8x512xbf16>
    %73 = arith.extf %72 : vector<8x512xbf16> to vector<8x512xf32>
    %74 = arith.truncf %69 : vector<8x128xf32> to vector<8x128xbf16>
    %cst_20 = arith.constant dense<0.000000e+00> : vector<8x512xf32>
    %75 = tpu.matmul %74, %3, %cst_20 {dimension_numbers = #tpu.dot_dimension_numbers<[1], [0], [0], [1], [0, 0, 1, 1], [], []>} : vector<8x128xbf16>, vector<128x512xbf16>, vector<8x512xf32> -> vector<8x512xf32>
    %76 = arith.addf %73, %75 : vector<8x512xf32>
    %77 = vector.extract_strided_slice %76 {offsets = [0, 0], sizes = [8, 128], strides = [1, 1]} : vector<8x512xf32> to vector<8x128xf32>
    %78 = arith.negf %77 : vector<8x128xf32>
    %79 = math.exp %78 : vector<8x128xf32>
    %cst_21 = arith.constant 1.000000e+00 : f32
    %80 = vector.broadcast %cst_21 : f32 to vector<8x128xf32>
    %81 = arith.addf %80, %79 : vector<8x128xf32>
    %82 = arith.divf %80, %81 : vector<8x128xf32>
    %83 = vector.extract_strided_slice %76 {offsets = [0, 128], sizes = [8, 128], strides = [1, 1]} : vector<8x512xf32> to vector<8x128xf32>
    %84 = arith.negf %83 : vector<8x128xf32>
    %85 = math.exp %84 : vector<8x128xf32>
    %cst_22 = arith.constant 1.000000e+00 : f32
    %86 = vector.broadcast %cst_22 : f32 to vector<8x128xf32>
    %87 = arith.addf %86, %85 : vector<8x128xf32>
    %88 = arith.divf %86, %87 : vector<8x128xf32>
    %89 = vector.extract_strided_slice %76 {offsets = [0, 256], sizes = [8, 128], strides = [1, 1]} : vector<8x512xf32> to vector<8x128xf32>
    %90 = math.tanh %89 : vector<8x128xf32>
    %91 = vector.extract_strided_slice %76 {offsets = [0, 384], sizes = [8, 128], strides = [1, 1]} : vector<8x512xf32> to vector<8x128xf32>
    %92 = arith.negf %91 : vector<8x128xf32>
    %93 = math.exp %92 : vector<8x128xf32>
    %cst_23 = arith.constant 1.000000e+00 : f32
    %94 = vector.broadcast %cst_23 : f32 to vector<8x128xf32>
    %95 = arith.addf %94, %93 : vector<8x128xf32>
    %96 = arith.divf %94, %95 : vector<8x128xf32>
    %97 = arith.mulf %88, %67 : vector<8x128xf32>
    %98 = arith.mulf %82, %90 : vector<8x128xf32>
    %99 = arith.addf %97, %98 : vector<8x128xf32>
    %100 = math.tanh %99 : vector<8x128xf32>
    %101 = arith.mulf %96, %100 : vector<8x128xf32>
    %c3_i32 = arith.constant 3 : i32
    %102 = arith.index_cast %c3_i32 : i32 to index
    %c0_24 = arith.constant 0 : index
    %c0_25 = arith.constant 0 : index
    %103 = vector.load %arg2[%102, %c0_24, %c0_25] : memref<8x8x512xbf16, #tpu.memory_space<vmem>>, vector<1x8x512xbf16>
    %104 = vector.shape_cast %103 : vector<1x8x512xbf16> to vector<8x512xbf16>
    %105 = arith.extf %104 : vector<8x512xbf16> to vector<8x512xf32>
    %106 = arith.truncf %101 : vector<8x128xf32> to vector<8x128xbf16>
    %cst_26 = arith.constant dense<0.000000e+00> : vector<8x512xf32>
    %107 = tpu.matmul %106, %3, %cst_26 {dimension_numbers = #tpu.dot_dimension_numbers<[1], [0], [0], [1], [0, 0, 1, 1], [], []>} : vector<8x128xbf16>, vector<128x512xbf16>, vector<8x512xf32> -> vector<8x512xf32>
    %108 = arith.addf %105, %107 : vector<8x512xf32>
    %109 = vector.extract_strided_slice %108 {offsets = [0, 0], sizes = [8, 128], strides = [1, 1]} : vector<8x512xf32> to vector<8x128xf32>
    %110 = arith.negf %109 : vector<8x128xf32>
    %111 = math.exp %110 : vector<8x128xf32>
    %cst_27 = arith.constant 1.000000e+00 : f32
    %112 = vector.broadcast %cst_27 : f32 to vector<8x128xf32>
    %113 = arith.addf %112, %111 : vector<8x128xf32>
    %114 = arith.divf %112, %113 : vector<8x128xf32>
    %115 = vector.extract_strided_slice %108 {offsets = [0, 128], sizes = [8, 128], strides = [1, 1]} : vector<8x512xf32> to vector<8x128xf32>
    %116 = arith.negf %115 : vector<8x128xf32>
    %117 = math.exp %116 : vector<8x128xf32>
    %cst_28 = arith.constant 1.000000e+00 : f32
    %118 = vector.broadcast %cst_28 : f32 to vector<8x128xf32>
    %119 = arith.addf %118, %117 : vector<8x128xf32>
    %120 = arith.divf %118, %119 : vector<8x128xf32>
    %121 = vector.extract_strided_slice %108 {offsets = [0, 256], sizes = [8, 128], strides = [1, 1]} : vector<8x512xf32> to vector<8x128xf32>
    %122 = math.tanh %121 : vector<8x128xf32>
    %123 = vector.extract_strided_slice %108 {offsets = [0, 384], sizes = [8, 128], strides = [1, 1]} : vector<8x512xf32> to vector<8x128xf32>
    %124 = arith.negf %123 : vector<8x128xf32>
    %125 = math.exp %124 : vector<8x128xf32>
    %cst_29 = arith.constant 1.000000e+00 : f32
    %126 = vector.broadcast %cst_29 : f32 to vector<8x128xf32>
    %127 = arith.addf %126, %125 : vector<8x128xf32>
    %128 = arith.divf %126, %127 : vector<8x128xf32>
    %129 = arith.mulf %120, %99 : vector<8x128xf32>
    %130 = arith.mulf %114, %122 : vector<8x128xf32>
    %131 = arith.addf %129, %130 : vector<8x128xf32>
    %132 = math.tanh %131 : vector<8x128xf32>
    %133 = arith.mulf %128, %132 : vector<8x128xf32>
    %c4_i32 = arith.constant 4 : i32
    %134 = arith.index_cast %c4_i32 : i32 to index
    %c0_30 = arith.constant 0 : index
    %c0_31 = arith.constant 0 : index
    %135 = vector.load %arg2[%134, %c0_30, %c0_31] : memref<8x8x512xbf16, #tpu.memory_space<vmem>>, vector<1x8x512xbf16>
    %136 = vector.shape_cast %135 : vector<1x8x512xbf16> to vector<8x512xbf16>
    %137 = arith.extf %136 : vector<8x512xbf16> to vector<8x512xf32>
    %138 = arith.truncf %133 : vector<8x128xf32> to vector<8x128xbf16>
    %cst_32 = arith.constant dense<0.000000e+00> : vector<8x512xf32>
    %139 = tpu.matmul %138, %3, %cst_32 {dimension_numbers = #tpu.dot_dimension_numbers<[1], [0], [0], [1], [0, 0, 1, 1], [], []>} : vector<8x128xbf16>, vector<128x512xbf16>, vector<8x512xf32> -> vector<8x512xf32>
    %140 = arith.addf %137, %139 : vector<8x512xf32>
    %141 = vector.extract_strided_slice %140 {offsets = [0, 0], sizes = [8, 128], strides = [1, 1]} : vector<8x512xf32> to vector<8x128xf32>
    %142 = arith.negf %141 : vector<8x128xf32>
    %143 = math.exp %142 : vector<8x128xf32>
    %cst_33 = arith.constant 1.000000e+00 : f32
    %144 = vector.broadcast %cst_33 : f32 to vector<8x128xf32>
    %145 = arith.addf %144, %143 : vector<8x128xf32>
    %146 = arith.divf %144, %145 : vector<8x128xf32>
    %147 = vector.extract_strided_slice %140 {offsets = [0, 128], sizes = [8, 128], strides = [1, 1]} : vector<8x512xf32> to vector<8x128xf32>
    %148 = arith.negf %147 : vector<8x128xf32>
    %149 = math.exp %148 : vector<8x128xf32>
    %cst_34 = arith.constant 1.000000e+00 : f32
    %150 = vector.broadcast %cst_34 : f32 to vector<8x128xf32>
    %151 = arith.addf %150, %149 : vector<8x128xf32>
    %152 = arith.divf %150, %151 : vector<8x128xf32>
    %153 = vector.extract_strided_slice %140 {offsets = [0, 256], sizes = [8, 128], strides = [1, 1]} : vector<8x512xf32> to vector<8x128xf32>
    %154 = math.tanh %153 : vector<8x128xf32>
    %155 = vector.extract_strided_slice %140 {offsets = [0, 384], sizes = [8, 128], strides = [1, 1]} : vector<8x512xf32> to vector<8x128xf32>
    %156 = arith.negf %155 : vector<8x128xf32>
    %157 = math.exp %156 : vector<8x128xf32>
    %cst_35 = arith.constant 1.000000e+00 : f32
    %158 = vector.broadcast %cst_35 : f32 to vector<8x128xf32>
    %159 = arith.addf %158, %157 : vector<8x128xf32>
    %160 = arith.divf %158, %159 : vector<8x128xf32>
    %161 = arith.mulf %152, %131 : vector<8x128xf32>
    %162 = arith.mulf %146, %154 : vector<8x128xf32>
    %163 = arith.addf %161, %162 : vector<8x128xf32>
    %164 = math.tanh %163 : vector<8x128xf32>
    %165 = arith.mulf %160, %164 : vector<8x128xf32>
    %c5_i32 = arith.constant 5 : i32
    %166 = arith.index_cast %c5_i32 : i32 to index
    %c0_36 = arith.constant 0 : index
    %c0_37 = arith.constant 0 : index
    %167 = vector.load %arg2[%166, %c0_36, %c0_37] : memref<8x8x512xbf16, #tpu.memory_space<vmem>>, vector<1x8x512xbf16>
    %168 = vector.shape_cast %167 : vector<1x8x512xbf16> to vector<8x512xbf16>
    %169 = arith.extf %168 : vector<8x512xbf16> to vector<8x512xf32>
    %170 = arith.truncf %165 : vector<8x128xf32> to vector<8x128xbf16>
    %cst_38 = arith.constant dense<0.000000e+00> : vector<8x512xf32>
    %171 = tpu.matmul %170, %3, %cst_38 {dimension_numbers = #tpu.dot_dimension_numbers<[1], [0], [0], [1], [0, 0, 1, 1], [], []>} : vector<8x128xbf16>, vector<128x512xbf16>, vector<8x512xf32> -> vector<8x512xf32>
    %172 = arith.addf %169, %171 : vector<8x512xf32>
    %173 = vector.extract_strided_slice %172 {offsets = [0, 0], sizes = [8, 128], strides = [1, 1]} : vector<8x512xf32> to vector<8x128xf32>
    %174 = arith.negf %173 : vector<8x128xf32>
    %175 = math.exp %174 : vector<8x128xf32>
    %cst_39 = arith.constant 1.000000e+00 : f32
    %176 = vector.broadcast %cst_39 : f32 to vector<8x128xf32>
    %177 = arith.addf %176, %175 : vector<8x128xf32>
    %178 = arith.divf %176, %177 : vector<8x128xf32>
    %179 = vector.extract_strided_slice %172 {offsets = [0, 128], sizes = [8, 128], strides = [1, 1]} : vector<8x512xf32> to vector<8x128xf32>
    %180 = arith.negf %179 : vector<8x128xf32>
    %181 = math.exp %180 : vector<8x128xf32>
    %cst_40 = arith.constant 1.000000e+00 : f32
    %182 = vector.broadcast %cst_40 : f32 to vector<8x128xf32>
    %183 = arith.addf %182, %181 : vector<8x128xf32>
    %184 = arith.divf %182, %183 : vector<8x128xf32>
    %185 = vector.extract_strided_slice %172 {offsets = [0, 256], sizes = [8, 128], strides = [1, 1]} : vector<8x512xf32> to vector<8x128xf32>
    %186 = math.tanh %185 : vector<8x128xf32>
    %187 = vector.extract_strided_slice %172 {offsets = [0, 384], sizes = [8, 128], strides = [1, 1]} : vector<8x512xf32> to vector<8x128xf32>
    %188 = arith.negf %187 : vector<8x128xf32>
    %189 = math.exp %188 : vector<8x128xf32>
    %cst_41 = arith.constant 1.000000e+00 : f32
    %190 = vector.broadcast %cst_41 : f32 to vector<8x128xf32>
    %191 = arith.addf %190, %189 : vector<8x128xf32>
    %192 = arith.divf %190, %191 : vector<8x128xf32>
    %193 = arith.mulf %184, %163 : vector<8x128xf32>
    %194 = arith.mulf %178, %186 : vector<8x128xf32>
    %195 = arith.addf %193, %194 : vector<8x128xf32>
    %196 = math.tanh %195 : vector<8x128xf32>
    %197 = arith.mulf %192, %196 : vector<8x128xf32>
    %c6_i32 = arith.constant 6 : i32
    %198 = arith.index_cast %c6_i32 : i32 to index
    %c0_42 = arith.constant 0 : index
    %c0_43 = arith.constant 0 : index
    %199 = vector.load %arg2[%198, %c0_42, %c0_43] : memref<8x8x512xbf16, #tpu.memory_space<vmem>>, vector<1x8x512xbf16>
    %200 = vector.shape_cast %199 : vector<1x8x512xbf16> to vector<8x512xbf16>
    %201 = arith.extf %200 : vector<8x512xbf16> to vector<8x512xf32>
    %202 = arith.truncf %197 : vector<8x128xf32> to vector<8x128xbf16>
    %cst_44 = arith.constant dense<0.000000e+00> : vector<8x512xf32>
    %203 = tpu.matmul %202, %3, %cst_44 {dimension_numbers = #tpu.dot_dimension_numbers<[1], [0], [0], [1], [0, 0, 1, 1], [], []>} : vector<8x128xbf16>, vector<128x512xbf16>, vector<8x512xf32> -> vector<8x512xf32>
    %204 = arith.addf %201, %203 : vector<8x512xf32>
    %205 = vector.extract_strided_slice %204 {offsets = [0, 0], sizes = [8, 128], strides = [1, 1]} : vector<8x512xf32> to vector<8x128xf32>
    %206 = arith.negf %205 : vector<8x128xf32>
    %207 = math.exp %206 : vector<8x128xf32>
    %cst_45 = arith.constant 1.000000e+00 : f32
    %208 = vector.broadcast %cst_45 : f32 to vector<8x128xf32>
    %209 = arith.addf %208, %207 : vector<8x128xf32>
    %210 = arith.divf %208, %209 : vector<8x128xf32>
    %211 = vector.extract_strided_slice %204 {offsets = [0, 128], sizes = [8, 128], strides = [1, 1]} : vector<8x512xf32> to vector<8x128xf32>
    %212 = arith.negf %211 : vector<8x128xf32>
    %213 = math.exp %212 : vector<8x128xf32>
    %cst_46 = arith.constant 1.000000e+00 : f32
    %214 = vector.broadcast %cst_46 : f32 to vector<8x128xf32>
    %215 = arith.addf %214, %213 : vector<8x128xf32>
    %216 = arith.divf %214, %215 : vector<8x128xf32>
    %217 = vector.extract_strided_slice %204 {offsets = [0, 256], sizes = [8, 128], strides = [1, 1]} : vector<8x512xf32> to vector<8x128xf32>
    %218 = math.tanh %217 : vector<8x128xf32>
    %219 = vector.extract_strided_slice %204 {offsets = [0, 384], sizes = [8, 128], strides = [1, 1]} : vector<8x512xf32> to vector<8x128xf32>
    %220 = arith.negf %219 : vector<8x128xf32>
    %221 = math.exp %220 : vector<8x128xf32>
    %cst_47 = arith.constant 1.000000e+00 : f32
    %222 = vector.broadcast %cst_47 : f32 to vector<8x128xf32>
    %223 = arith.addf %222, %221 : vector<8x128xf32>
    %224 = arith.divf %222, %223 : vector<8x128xf32>
    %225 = arith.mulf %216, %195 : vector<8x128xf32>
    %226 = arith.mulf %210, %218 : vector<8x128xf32>
    %227 = arith.addf %225, %226 : vector<8x128xf32>
    %228 = math.tanh %227 : vector<8x128xf32>
    %229 = arith.mulf %224, %228 : vector<8x128xf32>
    %c7_i32 = arith.constant 7 : i32
    %230 = arith.index_cast %c7_i32 : i32 to index
    %c0_48 = arith.constant 0 : index
    %c0_49 = arith.constant 0 : index
    %231 = vector.load %arg2[%230, %c0_48, %c0_49] : memref<8x8x512xbf16, #tpu.memory_space<vmem>>, vector<1x8x512xbf16>
    %232 = vector.shape_cast %231 : vector<1x8x512xbf16> to vector<8x512xbf16>
    %233 = arith.extf %232 : vector<8x512xbf16> to vector<8x512xf32>
    %234 = arith.truncf %229 : vector<8x128xf32> to vector<8x128xbf16>
    %cst_50 = arith.constant dense<0.000000e+00> : vector<8x512xf32>
    %235 = tpu.matmul %234, %3, %cst_50 {dimension_numbers = #tpu.dot_dimension_numbers<[1], [0], [0], [1], [0, 0, 1, 1], [], []>} : vector<8x128xbf16>, vector<128x512xbf16>, vector<8x512xf32> -> vector<8x512xf32>
    %236 = arith.addf %233, %235 : vector<8x512xf32>
    %237 = vector.extract_strided_slice %236 {offsets = [0, 0], sizes = [8, 128], strides = [1, 1]} : vector<8x512xf32> to vector<8x128xf32>
    %238 = arith.negf %237 : vector<8x128xf32>
    %239 = math.exp %238 : vector<8x128xf32>
    %cst_51 = arith.constant 1.000000e+00 : f32
    %240 = vector.broadcast %cst_51 : f32 to vector<8x128xf32>
    %241 = arith.addf %240, %239 : vector<8x128xf32>
    %242 = arith.divf %240, %241 : vector<8x128xf32>
    %243 = vector.extract_strided_slice %236 {offsets = [0, 128], sizes = [8, 128], strides = [1, 1]} : vector<8x512xf32> to vector<8x128xf32>
    %244 = arith.negf %243 : vector<8x128xf32>
    %245 = math.exp %244 : vector<8x128xf32>
    %cst_52 = arith.constant 1.000000e+00 : f32
    %246 = vector.broadcast %cst_52 : f32 to vector<8x128xf32>
    %247 = arith.addf %246, %245 : vector<8x128xf32>
    %248 = arith.divf %246, %247 : vector<8x128xf32>
    %249 = vector.extract_strided_slice %236 {offsets = [0, 256], sizes = [8, 128], strides = [1, 1]} : vector<8x512xf32> to vector<8x128xf32>
    %250 = math.tanh %249 : vector<8x128xf32>
    %251 = vector.extract_strided_slice %236 {offsets = [0, 384], sizes = [8, 128], strides = [1, 1]} : vector<8x512xf32> to vector<8x128xf32>
    %252 = arith.negf %251 : vector<8x128xf32>
    %253 = math.exp %252 : vector<8x128xf32>
    %cst_53 = arith.constant 1.000000e+00 : f32
    %254 = vector.broadcast %cst_53 : f32 to vector<8x128xf32>
    %255 = arith.addf %254, %253 : vector<8x128xf32>
    %256 = arith.divf %254, %255 : vector<8x128xf32>
    %257 = arith.mulf %248, %227 : vector<8x128xf32>
    %258 = arith.mulf %242, %250 : vector<8x128xf32>
    %259 = arith.addf %257, %258 : vector<8x128xf32>
    %260 = math.tanh %259 : vector<8x128xf32>
    %261 = arith.mulf %256, %260 : vector<8x128xf32>
    %c8_i32 = arith.constant 8 : i32
    %c0_54 = arith.constant 0 : index
    %c0_55 = arith.constant 0 : index
    %262 = vector.load %arg4[%c0_54, %c0_55] : memref<8x128xf32, #tpu.memory_space<vmem>>, vector<8x128xf32>
    tpu.vector_store %arg4[%c0_54, %c0_55], %261 {strides = array<i32>} : memref<8x128xf32, #tpu.memory_space<vmem>>, vector<8x128xf32>,
    %c0_56 = arith.constant 0 : index
    %c0_57 = arith.constant 0 : index
    %263 = vector.load %arg5[%c0_56, %c0_57] : memref<8x128xf32, #tpu.memory_space<vmem>>, vector<8x128xf32>
    tpu.vector_store %arg5[%c0_56, %c0_57], %259 {strides = array<i32>} : memref<8x128xf32, #tpu.memory_space<vmem>>, vector<8x128xf32>,
    return
  }
  func.func @transform_0(%arg0: i32, %arg1: i32) -> (i32, i32, i32) {
    %c0_i32 = arith.constant 0 : i32
    %c0_i32_0 = arith.constant 0 : i32
    return %arg1, %arg0, %c0_i32 : i32, i32, i32
  }
  func.func @transform_1(%arg0: i32, %arg1: i32) -> (i32, i32) {
    %c0_i32 = arith.constant 0 : i32
    %c0_i32_0 = arith.constant 0 : i32
    %c0_i32_1 = arith.constant 0 : i32
    return %c0_i32, %c0_i32_0 : i32, i32
  }
  func.func @transform_2(%arg0: i32, %arg1: i32) -> (i32, i32) {
    %c0_i32 = arith.constant 0 : i32
    %c0_i32_0 = arith.constant 0 : i32
    return %arg0, %c0_i32 : i32, i32
  }
  func.func @transform_3(%arg0: i32, %arg1: i32) -> (i32, i32) {
    %c0_i32 = arith.constant 0 : i32
    %c0_i32_0 = arith.constant 0 : i32
    return %arg0, %c0_i32 : i32, i32
  }
}

</mosaic_0001>

<bundles_post_ra>
// kernel: tpu_custom_call.1
= control target key start
LH: loop header
LB: loop body
LE: loop exit
PB: predicated region body
PF: predicated region fallthrough
CT: control target
= control target key end

     0   :  { %9 = vsyncpa [#allocation3], 0  ;;  %s1991_s0 = inlined_call_operand.hbm [shape: bf16[8,8,512], index: 0, kind: input, shape index: {}]   ;;  %s1992_s1 = inlined_call_operand.hbm [shape: bf16[128,512], index: 1, kind: input, shape index: {}]   ;;  %s1993_s2 = inlined_call_operand.hbm [shape: f32[8,128], index: 2, kind: output, shape index: {0}]   ;;  %s1994_s3 = inlined_call_operand.hbm [shape: f32[8,128], index: 3, kind: output, shape index: {1}]  }
   0x1   :  { %10 = vsyncpa [#allocation6], 0 }
   0x2   :  { %11 = vsyncpa [#allocation4], 0 }
   0x3   :  { %12 = vsyncpa [#allocation9], 0  ;;  %s1587_s12 = smov [#allocation2]   ;;  %s1491_s16 = scalar_lea.hbm %s1991_s0, 2048 }
   0x4   :  { %s18_s13 = sshll.u32 %s1587_s12, 4  ;;  %p1492_p0 = scmp.ne.s32.totalorder %s1991_s0, %s1491_s16  ;;  %s19_s13 = int_to_ptr.vmem [resolvable:$true] %s18_s13 }
   0x5   :  { %p1495_p1 = scmp.lt.u32.totalorder %s1491_s16, %s1991_s0 }
   0x7   :  { %p1497_p2 = pnand %p1495_p1, %p1492_p0 }
   0x9   :  { %1500 = shalt.err (!%p1497_p2)
}
   0xa   :  { %s1501_s21 = scalar_lea.vmem %s19_s13, 2048  ;;  %p1506_p4 = scmp.lt.s32.totalorder %s19_s13, %s19_s13 }
   0xb   :  { %p1502_p3 = scmp.ne.s32.totalorder %s19_s13, %s1501_s21  ;;  %p1507_p5 = scmp.lt.s32.totalorder %s1501_s21, %s1501_s21 }
   0xd   :  { %p1508_p6 = por %p1507_p5, %p1506_p4 }
   0xf   :  { %p1509_p7 = pnand %p1508_p6, %p1502_p3 }
  0x11   :  { %1512 = shalt.err (!%p1509_p7)
}
  0x12   :  { %s1588_s22 = smov 256   ;;  %s1589_s23 = smov 16  }
  0x13   :  { %24 = dma.hbm_to_vmem [thread:$0]  %s1991_s0, 2048, %s19_s13, [#allocation3], %s1588_s22, %s1588_s22, %s1589_s23  }
  0x14   :  { %s1590_s26 = smov [#allocation5]   ;;  %s1513_s30 = scalar_lea.hbm %s1992_s1, 4096 }
  0x15   :  { %s30_s27 = sshll.u32 %s1590_s26, 4  ;;  %p1514_p8 = scmp.ne.s32.totalorder %s1992_s1, %s1513_s30  ;;  %s31_s27 = int_to_ptr.vmem [resolvable:$true] %s30_s27 }
  0x16   :  { %p1517_p9 = scmp.lt.u32.totalorder %s1513_s30, %s1992_s1 }
  0x18   :  { %p1519_p10 = pnand %p1517_p9, %p1514_p8 }
  0x1a   :  { %1522 = shalt.err (!%p1519_p10)
}
  0x1b   :  { %s1523_s8 = scalar_lea.vmem %s31_s27, 4096  ;;  %p1528_p12 = scmp.lt.s32.totalorder %s31_s27, %s31_s27 }
  0x1c   :  { %p1524_p11 = scmp.ne.s32.totalorder %s31_s27, %s1523_s8  ;;  %p1529_p13 = scmp.lt.s32.totalorder %s1523_s8, %s1523_s8 }
  0x1e   :  { %p1530_p0 = por %p1529_p13, %p1528_p12 }
  0x20   :  { %p1531_p1 = pnand %p1530_p0, %p1524_p11 }
  0x22   :  { %1534 = shalt.err (!%p1531_p1)
}
  0x23   :  { %36 = dma.hbm_to_vmem [thread:$0]  %s1992_s1, 4096, %s31_s27, [#allocation6], %s1588_s22, %s1588_s22, %s1589_s23  }
  0x24   :  { %1579 = dma.done.wait [#allocation3], 2048  }
  0x25   :  { %1580 = vsyncadd [#allocation3], 4294965248 }
  0x26   :  { %1581 = dma.done.wait [#allocation6], 4096  }
  0x27   :  { %1582 = vsyncadd [#allocation6], 4294963200  ;;  %v1591_v0 = vmov 0   ;;  %v1641_v1 = vld [vmem:[#allocation5 + $0x4] ss:$16 sps:$4 sm:$0xff]   ;;  %v1592_v33 = vmov 0.0|0.0  }
  0x28   :  { %283 = vmatprep.mubr.bf16.mxu0 %v1591_v0  ;;  %324 = vmatprep.mubr.bf16.mxu1 %v1591_v0  ;;  %v1643_v2 = vld [vmem:[#allocation5] ss:$16 sps:$4 sm:$0xff]   ;;  %v1646_v3 = vld [vmem:[#allocation5 + $0x24] ss:$16 sps:$4 sm:$0xff]   ;;  %v1654_v6 = vld [vmem:[#allocation5 + $0xc] ss:$16 sps:$4 sm:$0xff]  }
  0x29   :  { %251 = vmatprep.subr.bf16.mxu0 %v1641_v1  ;;  %v1649_v4 = vld [vmem:[#allocation5 + $0x20] ss:$16 sps:$4 sm:$0xff]   ;;  %v1652_v5 = vld [vmem:[#allocation5 + $0x44] ss:$16 sps:$4 sm:$0xff]   ;;  %v1656_v7 = vld [vmem:[#allocation5 + $0x8] ss:$16 sps:$4 sm:$0xff]   ;;  %292 = vmatprep.subr.bf16.mxu1 %v1654_v6 }
  0x2a   :  { %252 = vmatpush1.bf16.msra.mxu0 %v1643_v2  ;;  %v1659_v8 = vld [vmem:[#allocation5 + $0x40] ss:$16 sps:$4 sm:$0xff]   ;;  %v1663_v9 = vld [vmem:[#allocation5 + $0x64] ss:$16 sps:$4 sm:$0xff]   ;;  %293 = vmatpush1.bf16.msra.mxu1 %v1656_v7  ;;  %v1666_v10 = vld [vmem:[#allocation5 + $0x2c] ss:$16 sps:$4 sm:$0xff]  }
  0x2b   :  { %253 = vmatprep.subr.bf16.mxu0 %v1646_v3  ;;  %v1668_v11 = vld [vmem:[#allocation5 + $0x28] ss:$16 sps:$4 sm:$0xff]   ;;  %294 = vmatprep.subr.bf16.mxu1 %v1666_v10  ;;  %v1672_v12 = vld [vmem:[#allocation5 + $0x60] ss:$16 sps:$4 sm:$0xff]   ;;  %v1674_v13 = vld [vmem:[#allocation5 + $0x84] ss:$16 sps:$4 sm:$0xff]  }
  0x2c   :  { %v1676_v14 = vld [vmem:[#allocation5 + $0x4c] ss:$16 sps:$4 sm:$0xff]   ;;  %v1680_v15 = vld [vmem:[#allocation5 + $0x48] ss:$16 sps:$4 sm:$0xff]   ;;  %v1686_v17 = vld [vmem:[#allocation5 + $0x80] ss:$16 sps:$4 sm:$0xff]  }
  0x2d   :  { %v1683_v16 = vld [vmem:[#allocation5 + $0x6c] ss:$16 sps:$4 sm:$0xff]   ;;  %v1689_v18 = vld [vmem:[#allocation5 + $0xa4] ss:$16 sps:$4 sm:$0xff]   ;;  %v1692_v19 = vld [vmem:[#allocation5 + $0x68] ss:$16 sps:$4 sm:$0xff]  }
  0x2e   :  { %254 = vmatpush1.bf16.msra.mxu0 %v1649_v4  ;;  %295 = vmatpush1.bf16.msra.mxu1 %v1668_v11  ;;  %v1695_v20 = vld [vmem:[#allocation5 + $0x8c] ss:$16 sps:$4 sm:$0xff]   ;;  %v1698_v21 = vld [vmem:[#allocation5 + $0xa0] ss:$16 sps:$4 sm:$0xff]   ;;  %v1700_v22 = vld [vmem:[#allocation5 + $0xc4] ss:$16 sps:$4 sm:$0xff]  }
  0x2f   :  { %255 = vmatprep.subr.bf16.mxu0 %v1652_v5  ;;  %296 = vmatprep.subr.bf16.mxu1 %v1676_v14  ;;  %v1704_v23 = vld [vmem:[#allocation5 + $0x88] ss:$16 sps:$4 sm:$0xff]   ;;  %v1707_v24 = vld [vmem:[#allocation5 + $0xac] ss:$16 sps:$4 sm:$0xff]   ;;  %v1710_v25 = vld [vmem:[#allocation5 + $0xc0] ss:$16 sps:$4 sm:$0xff]  }
  0x30   :  { %v1713_v26 = vld [vmem:[#allocation5 + $0xe4] ss:$16 sps:$4 sm:$0xff]   ;;  %v1716_v27 = vld [vmem:[#allocation5 + $0xa8] ss:$16 sps:$4 sm:$0xff]   ;;  %v1719_v28 = vld [vmem:[#allocation5 + $0xcc] ss:$16 sps:$4 sm:$0xff]  }
  0x31   :  { %v1722_v29 = vld [vmem:[#allocation5 + $0xe0] ss:$16 sps:$4 sm:$0xff]   ;;  %v1726_v30 = vld [vmem:[#allocation5 + $0xc8] ss:$16 sps:$4 sm:$0xff]   ;;  %v1729_v31 = vld [vmem:[#allocation5 + $0xec] ss:$16 sps:$4 sm:$0xff]  }
  0x32   :  { %256 = vmatpush1.bf16.msra.mxu0 %v1659_v8  ;;  %297 = vmatpush1.bf16.msra.mxu1 %v1680_v15  ;;  %v1733_v32 = vld [vmem:[#allocation5 + $0xe8] ss:$16 sps:$4 sm:$0xff]   ;;  %v84_v34 = vld [vmem:[#allocation2] sm:$0xff]  ;;  %s1593_s1 = smov [#allocation8]  }
  0x33   :  { %257 = vmatprep.subr.bf16.mxu0 %v1663_v9  ;;  %298 = vmatprep.subr.bf16.mxu1 %v1683_v16  ;;  %v86_v35 = vunpack.c.l.bf16 %v84_v34  ;;  %v87_v36 = vunpack.c.h.bf16 %v84_v34  ;;  %v85_v38 = vld [vmem:[#allocation2 + $0x8] sm:$0xff]  ;;  %s1205_s10 = sshll.u32 %s1593_s1, 4  ;;  %s1206_s10 = int_to_ptr.vmem [resolvable:$true] %s1205_s10 }
  0x34   :  { %v89_v45 = vunpack.c.h.bf16 %v85_v38  ;;  %v88_v51 = vunpack.c.l.bf16 %v85_v38  ;;  %s1535_s11 = scalar_lea.vmem %s1206_s10, 128  ;;  %p1540_p3 = scmp.lt.s32.totalorder %s1206_s10, %s1206_s10 }
  0x35   :  { %p1536_p2 = scmp.ne.s32.totalorder %s1206_s10, %s1535_s11  ;;  %p1541_p4 = scmp.lt.s32.totalorder %s1535_s11, %s1535_s11 }
  0x36   :  { %258 = vmatpush1.bf16.msra.mxu0 %v1672_v12  ;;  %299 = vmatpush1.bf16.msra.mxu1 %v1692_v19 }
  0x37   :  { %259 = vmatprep.subr.bf16.mxu0 %v1674_v13  ;;  %300 = vmatprep.subr.bf16.mxu1 %v1695_v20  ;;  %p1542_p5 = por %p1541_p4, %p1540_p3 }
  0x39   :  { %p1543_p6 = pnand %p1542_p5, %p1536_p2 }
  0x3a   :  { %260 = vmatpush1.bf16.msra.mxu0 %v1686_v17  ;;  %301 = vmatpush1.bf16.msra.mxu1 %v1704_v23 }
  0x3b   :  { %261 = vmatprep.subr.bf16.mxu0 %v1689_v18  ;;  %302 = vmatprep.subr.bf16.mxu1 %v1707_v24 }
  0x3e   :  { %262 = vmatpush1.bf16.msra.mxu0 %v1698_v21  ;;  %303 = vmatpush1.bf16.msra.mxu1 %v1716_v27 }
  0x3f   :  { %263 = vmatprep.subr.bf16.mxu0 %v1700_v22  ;;  %304 = vmatprep.subr.bf16.mxu1 %v1719_v28 }
  0x42   :  { %264 = vmatpush1.bf16.msra.mxu0 %v1710_v25  ;;  %305 = vmatpush1.bf16.msra.mxu1 %v1726_v30 }
  0x43   :  { %265 = vmatprep.subr.bf16.mxu0 %v1713_v26  ;;  %306 = vmatprep.subr.bf16.mxu1 %v1729_v31 }
  0x46   :  { %266 = vmatpush1.bf16.msra.mxu0 %v1722_v29  ;;  %307 = vmatpush1.bf16.msra.mxu1 %v1733_v32 }
  0x47   :  { %369 = vmatprep.subr.bf16.mxu0 %v1641_v1  ;;  %410 = vmatprep.subr.bf16.mxu1 %v1654_v6 }
  0x49   :  { %284 = vmatmul.mubr.bf16.vlgmr.msra.gmra.mrb[0].mxu0 %v1592_v33  ;;  %325 = vmatmul.mubr.bf16.vlgmr.msra.gmra.mrb[0].mxu1 %v1592_v33 }
  0x4a   :  { %370 = vmatpush1.bf16.msra.mxu0 %v1643_v2  ;;  %401 = vmatprep.mubr.bf16.mxu0 %v1591_v0 }
  0x4b   :  { %371 = vmatprep.subr.bf16.mxu0 %v1646_v3  ;;  %411 = vmatpush1.bf16.msra.mxu1 %v1656_v7 }
  0x4c   :  { %412 = vmatprep.subr.bf16.mxu1 %v1666_v10  ;;  %442 = vmatprep.mubr.bf16.mxu1 %v1591_v0 }
  0x4e   :  { %372 = vmatpush1.bf16.msra.mxu0 %v1649_v4 }
  0x4f   :  { %373 = vmatprep.subr.bf16.mxu0 %v1652_v5  ;;  %413 = vmatpush1.bf16.msra.mxu1 %v1668_v11 }
  0x50   :  { %414 = vmatprep.subr.bf16.mxu1 %v1676_v14 }
  0x52   :  { %374 = vmatpush1.bf16.msra.mxu0 %v1659_v8 }
  0x53   :  { %375 = vmatprep.subr.bf16.mxu0 %v1663_v9  ;;  %415 = vmatpush1.bf16.msra.mxu1 %v1680_v15 }
  0x54   :  { %416 = vmatprep.subr.bf16.mxu1 %v1683_v16 }
  0x56   :  { %376 = vmatpush1.bf16.msra.mxu0 %v1672_v12 }
  0x57   :  { %377 = vmatprep.subr.bf16.mxu0 %v1674_v13  ;;  %417 = vmatpush1.bf16.msra.mxu1 %v1692_v19 }
  0x58   :  { %418 = vmatprep.subr.bf16.mxu1 %v1695_v20 }
  0x5a   :  { %378 = vmatpush1.bf16.msra.mxu0 %v1686_v17 }
  0x5b   :  { %379 = vmatprep.subr.bf16.mxu0 %v1689_v18  ;;  %419 = vmatpush1.bf16.msra.mxu1 %v1704_v23 }
  0x5c   :  { %420 = vmatprep.subr.bf16.mxu1 %v1707_v24 }
  0x5e   :  { %380 = vmatpush1.bf16.msra.mxu0 %v1698_v21 }
  0x5f   :  { %381 = vmatprep.subr.bf16.mxu0 %v1700_v22  ;;  %421 = vmatpush1.bf16.msra.mxu1 %v1716_v27 }
  0x60   :  { %422 = vmatprep.subr.bf16.mxu1 %v1719_v28 }
  0x62   :  { %382 = vmatpush1.bf16.msra.mxu0 %v1710_v25 }
  0x63   :  { %383 = vmatprep.subr.bf16.mxu0 %v1713_v26  ;;  %423 = vmatpush1.bf16.msra.mxu1 %v1726_v30 }
  0x64   :  { %424 = vmatprep.subr.bf16.mxu1 %v1729_v31 }
  0x66   :  { %384 = vmatpush1.bf16.msra.mxu0 %v1722_v29 }
  0x67   :  { %487 = vmatprep.subr.bf16.mxu0 %v1641_v1  ;;  %425 = vmatpush1.bf16.msra.mxu1 %v1733_v32 }
  0x68   :  { %528 = vmatprep.subr.bf16.mxu1 %v1654_v6 }
 0x11c   :  { %v285_v37 = vpop.f32.mrb[0].mxu0  ;;  %v326_v47 = vpop.f32.mrb[0].mxu1 }
 0x11d   :  { %v333_v39 = vadd.f32 %v285_v37, %v86_v35  ;;  %v287_v40 = vpop.f32.mrb[1].mxu0  ;;  %v328_v48 = vpop.f32.mrb[1].mxu1  ;;  %v335_v54 = vadd.f32 %v326_v47, %v88_v51 }
 0x11e   :  { %v334_v41 = vadd.f32 %v287_v40, %v87_v36  ;;  %v289_v42 = vpop.f32.mrb[2].mxu0  ;;  %v336_v49 = vadd.f32 %v328_v48, %v89_v45  ;;  %v330_v50 = vpop.f32.mrb[2].mxu1  ;;  %v362_v40 = vld [vmem:[#allocation2 + $0x10] sm:$0xff] }
 0x11f   :  { %v1251_v43 = vmul.f32 -1.442695, %v333_v39  ;;  %v290_v44 = vpop.f32.mrb[3].mxu0  ;;  %v331_v52 = vpop.f32.mrb[3].mxu1  ;;  %v365_v42 = vunpack.c.h.bf16 %v362_v40 }
 0x120   :  { %v1252_v46 = vmul.f32 -1.442695, %v334_v41  ;;  %v1253_v53 = vmul.f32 -1.442695, %v336_v49  ;;  %v364_v41 = vunpack.c.l.bf16 %v362_v40 }
 0x121   :  { %1331 = vpow2.f32 %v1251_v43 }
 0x122   :  { %1333 = vpow2.f32 %v1252_v46  ;;  %v363_v46 = vld [vmem:[#allocation2 + $0x18] sm:$0xff] }
 0x123   :  { %1335 = vpow2.f32 %v1253_v53 }
 0x124   :  { %1337 = vtanh.f32 %v335_v54 }
 0x12b   :  { %v1332_v55 = vpop.eup %1331 }
 0x12c   :  { %v1334_v56 = vpop.eup %1333  ;;  %v340_v57 = vadd.f32 1.0, %v1332_v55 }
 0x12d   :  { %v346_v58 = vadd.f32 1.0, %v1334_v56  ;;  %v1336_v59 = vpop.eup %1335  ;;  %v367_v56 = vunpack.c.h.bf16 %v363_v46 }
 0x12e   :  { %1339 = vrcp.f32 %v340_v57  ;;  %v1338_v60 = vpop.eup %1337  ;;  %v353_v62 = vadd.f32 1.0, %v1336_v59 }
 0x12f   :  { %1341 = vrcp.f32 %v346_v58  ;;  %v366_v58 = vunpack.c.l.bf16 %v363_v46 }
 0x130   :  { %1343 = vrcp.f32 %v353_v62 }
 0x138   :  { %v1340_v61 = vpop.eup %1339 }
 0x139   :  { %v1342_v63 = vpop.eup %1341  ;;  %v357_v33 = vmul.f32 %v1340_v61, %v1338_v60 }
 0x13a   :  { %v356_v34 = vmul.f32 0.0, %v1342_v63  ;;  %v1344_v36 = vpop.eup %1343 }
 0x13c   :  { %v1773_v35 = vadd.f32 %v357_v33, %v356_v34 }
 0x13e   :  { %1345 = vtanh.f32 %v1773_v35 }
 0x148   :  { %v1346_v37 = vpop.eup %1345 }
 0x149   :  { %v360_v38 = vmul.f32 %v1346_v37, %v1344_v36 }
 0x14b   :  { %v368_v39 = vpack.c.bf16 %v360_v38, %v360_v38 }
 0x14d   :  { %402 = vmatmul.mubr.bf16.vlgmr.msra.gmra.mrb[4].mxu0 %v368_v39  ;;  %443 = vmatmul.mubr.bf16.vlgmr.msra.gmra.mrb[4].mxu1 %v368_v39 }
 0x14e   :  { %488 = vmatpush1.bf16.msra.mxu0 %v1643_v2  ;;  %529 = vmatpush1.bf16.msra.mxu1 %v1656_v7 }
 0x14f   :  { %489 = vmatprep.subr.bf16.mxu0 %v1646_v3  ;;  %530 = vmatprep.subr.bf16.mxu1 %v1666_v10 }
 0x150   :  { %519 = vmatprep.mubr.bf16.mxu0 %v1591_v0  ;;  %560 = vmatprep.mubr.bf16.mxu1 %v1591_v0 }
 0x152   :  { %490 = vmatpush1.bf16.msra.mxu0 %v1649_v4  ;;  %531 = vmatpush1.bf16.msra.mxu1 %v1668_v11 }
 0x153   :  { %491 = vmatprep.subr.bf16.mxu0 %v1652_v5  ;;  %532 = vmatprep.subr.bf16.mxu1 %v1676_v14 }
 0x156   :  { %492 = vmatpush1.bf16.msra.mxu0 %v1659_v8  ;;  %533 = vmatpush1.bf16.msra.mxu1 %v1680_v15 }
 0x157   :  { %493 = vmatprep.subr.bf16.mxu0 %v1663_v9  ;;  %534 = vmatprep.subr.bf16.mxu1 %v1683_v16 }
 0x15a   :  { %494 = vmatpush1.bf16.msra.mxu0 %v1672_v12  ;;  %535 = vmatpush1.bf16.msra.mxu1 %v1692_v19 }
 0x15b   :  { %495 = vmatprep.subr.bf16.mxu0 %v1674_v13  ;;  %536 = vmatprep.subr.bf16.mxu1 %v1695_v20 }
 0x15e   :  { %496 = vmatpush1.bf16.msra.mxu0 %v1686_v17  ;;  %537 = vmatpush1.bf16.msra.mxu1 %v1704_v23 }
 0x15f   :  { %497 = vmatprep.subr.bf16.mxu0 %v1689_v18  ;;  %538 = vmatprep.subr.bf16.mxu1 %v1707_v24 }
 0x162   :  { %498 = vmatpush1.bf16.msra.mxu0 %v1698_v21  ;;  %539 = vmatpush1.bf16.msra.mxu1 %v1716_v27 }
 0x163   :  { %499 = vmatprep.subr.bf16.mxu0 %v1700_v22  ;;  %540 = vmatprep.subr.bf16.mxu1 %v1719_v28 }
 0x166   :  { %500 = vmatpush1.bf16.msra.mxu0 %v1710_v25  ;;  %541 = vmatpush1.bf16.msra.mxu1 %v1726_v30 }
 0x167   :  { %501 = vmatprep.subr.bf16.mxu0 %v1713_v26  ;;  %542 = vmatprep.subr.bf16.mxu1 %v1729_v31 }
 0x16a   :  { %502 = vmatpush1.bf16.msra.mxu0 %v1722_v29  ;;  %543 = vmatpush1.bf16.msra.mxu1 %v1733_v32 }
 0x16b   :  { %605 = vmatprep.subr.bf16.mxu0 %v1641_v1  ;;  %646 = vmatprep.subr.bf16.mxu1 %v1654_v6 }
 0x220   :  { %v403_v43 = vpop.f32.mrb[4].mxu0  ;;  %v444_v44 = vpop.f32.mrb[4].mxu1 }
 0x221   :  { %v451_v45 = vadd.f32 %v403_v43, %v364_v41  ;;  %v405_v47 = vpop.f32.mrb[5].mxu0  ;;  %v446_v48 = vpop.f32.mrb[5].mxu1  ;;  %v453_v60 = vadd.f32 %v444_v44, %v366_v58 }
 0x222   :  { %v452_v49 = vadd.f32 %v405_v47, %v365_v42  ;;  %v407_v50 = vpop.f32.mrb[6].mxu0  ;;  %v448_v51 = vpop.f32.mrb[6].mxu1  ;;  %v454_v57 = vadd.f32 %v446_v48, %v367_v56 }
 0x223   :  { %v1254_v52 = vmul.f32 -1.442695, %v451_v45  ;;  %v408_v53 = vpop.f32.mrb[7].mxu0  ;;  %v449_v54 = vpop.f32.mrb[7].mxu1 }
 0x224   :  { %v1255_v55 = vmul.f32 -1.442695, %v452_v49  ;;  %v1256_v59 = vmul.f32 -1.442695, %v454_v57 }
 0x225   :  { %1347 = vpow2.f32 %v1254_v52  ;;  %v481_v52 = vld [vmem:[#allocation2 + $0x28] sm:$0xff] }
 0x226   :  { %1349 = vpow2.f32 %v1255_v55 }
 0x227   :  { %1351 = vpow2.f32 %v1256_v59 }
 0x228   :  { %1353 = vtanh.f32 %v453_v60 }
 0x22f   :  { %v1348_v61 = vpop.eup %1347 }
 0x230   :  { %v1350_v62 = vpop.eup %1349  ;;  %v458_v63 = vadd.f32 1.0, %v1348_v61 }
 0x231   :  { %v464_v33 = vadd.f32 1.0, %v1350_v62  ;;  %v1352_v34 = vpop.eup %1351  ;;  %v485_v62 = vunpack.c.h.bf16 %v481_v52 }
 0x232   :  { %1355 = vrcp.f32 %v458_v63  ;;  %v1354_v36 = vpop.eup %1353  ;;  %v471_v40 = vadd.f32 1.0, %v1352_v34 }
 0x233   :  { %1357 = vrcp.f32 %v464_v33  ;;  %v484_v33 = vunpack.c.l.bf16 %v481_v52 }
 0x234   :  { %1359 = vrcp.f32 %v471_v40 }
 0x23c   :  { %v1356_v37 = vpop.eup %1355 }
 0x23d   :  { %v1358_v38 = vpop.eup %1357  ;;  %v475_v39 = vmul.f32 %v1356_v37, %v1354_v36 }
 0x23e   :  { %v474_v41 = vmul.f32 %v1358_v38, %v1773_v35  ;;  %v1360_v43 = vpop.eup %1359  ;;  %v480_v35 = vld [vmem:[#allocation2 + $0x20] sm:$0xff] }
 0x23f   :  { %v482_v47 = vunpack.c.l.bf16 %v480_v35  ;;  %v483_v48 = vunpack.c.h.bf16 %v480_v35 }
 0x240   :  { %v1811_v42 = vadd.f32 %v475_v39, %v474_v41 }
 0x242   :  { %1361 = vtanh.f32 %v1811_v42 }
 0x24c   :  { %v1362_v44 = vpop.eup %1361 }
 0x24d   :  { %v478_v45 = vmul.f32 %v1362_v44, %v1360_v43 }
 0x24f   :  { %v486_v46 = vpack.c.bf16 %v478_v45, %v478_v45 }
 0x251   :  { %520 = vmatmul.mubr.bf16.vlgmr.msra.gmra.mrb[8].mxu0 %v486_v46  ;;  %561 = vmatmul.mubr.bf16.vlgmr.msra.gmra.mrb[8].mxu1 %v486_v46 }
 0x252   :  { %606 = vmatpush1.bf16.msra.mxu0 %v1643_v2  ;;  %647 = vmatpush1.bf16.msra.mxu1 %v1656_v7 }
 0x253   :  { %607 = vmatprep.subr.bf16.mxu0 %v1646_v3  ;;  %648 = vmatprep.subr.bf16.mxu1 %v1666_v10 }
 0x254   :  { %637 = vmatprep.mubr.bf16.mxu0 %v1591_v0  ;;  %678 = vmatprep.mubr.bf16.mxu1 %v1591_v0 }
 0x256   :  { %608 = vmatpush1.bf16.msra.mxu0 %v1649_v4  ;;  %649 = vmatpush1.bf16.msra.mxu1 %v1668_v11 }
 0x257   :  { %609 = vmatprep.subr.bf16.mxu0 %v1652_v5  ;;  %650 = vmatprep.subr.bf16.mxu1 %v1676_v14 }
 0x25a   :  { %610 = vmatpush1.bf16.msra.mxu0 %v1659_v8  ;;  %651 = vmatpush1.bf16.msra.mxu1 %v1680_v15 }
 0x25b   :  { %611 = vmatprep.subr.bf16.mxu0 %v1663_v9  ;;  %652 = vmatprep.subr.bf16.mxu1 %v1683_v16 }
 0x25e   :  { %612 = vmatpush1.bf16.msra.mxu0 %v1672_v12  ;;  %653 = vmatpush1.bf16.msra.mxu1 %v1692_v19 }
 0x25f   :  { %613 = vmatprep.subr.bf16.mxu0 %v1674_v13  ;;  %654 = vmatprep.subr.bf16.mxu1 %v1695_v20 }
 0x262   :  { %614 = vmatpush1.bf16.msra.mxu0 %v1686_v17  ;;  %655 = vmatpush1.bf16.msra.mxu1 %v1704_v23 }
 0x263   :  { %615 = vmatprep.subr.bf16.mxu0 %v1689_v18  ;;  %656 = vmatprep.subr.bf16.mxu1 %v1707_v24 }
 0x266   :  { %616 = vmatpush1.bf16.msra.mxu0 %v1698_v21  ;;  %657 = vmatpush1.bf16.msra.mxu1 %v1716_v27 }
 0x267   :  { %617 = vmatprep.subr.bf16.mxu0 %v1700_v22  ;;  %658 = vmatprep.subr.bf16.mxu1 %v1719_v28 }
 0x26a   :  { %618 = vmatpush1.bf16.msra.mxu0 %v1710_v25  ;;  %659 = vmatpush1.bf16.msra.mxu1 %v1726_v30 }
 0x26b   :  { %619 = vmatprep.subr.bf16.mxu0 %v1713_v26  ;;  %660 = vmatprep.subr.bf16.mxu1 %v1729_v31 }
 0x26e   :  { %620 = vmatpush1.bf16.msra.mxu0 %v1722_v29  ;;  %661 = vmatpush1.bf16.msra.mxu1 %v1733_v32 }
 0x26f   :  { %723 = vmatprep.subr.bf16.mxu0 %v1641_v1  ;;  %764 = vmatprep.subr.bf16.mxu1 %v1654_v6 }
 0x324   :  { %v521_v49 = vpop.f32.mrb[8].mxu0  ;;  %v562_v50 = vpop.f32.mrb[8].mxu1 }
 0x325   :  { %v569_v51 = vadd.f32 %v521_v49, %v482_v47  ;;  %v523_v53 = vpop.f32.mrb[9].mxu0  ;;  %v564_v54 = vpop.f32.mrb[9].mxu1  ;;  %v571_v36 = vadd.f32 %v562_v50, %v484_v33 }
 0x326   :  { %v570_v55 = vadd.f32 %v523_v53, %v483_v48  ;;  %v525_v56 = vpop.f32.mrb[10].mxu0  ;;  %v566_v57 = vpop.f32.mrb[10].mxu1  ;;  %v572_v63 = vadd.f32 %v564_v54, %v485_v62 }
 0x327   :  { %v1257_v58 = vmul.f32 -1.442695, %v569_v51  ;;  %v526_v59 = vpop.f32.mrb[11].mxu0  ;;  %v567_v60 = vpop.f32.mrb[11].mxu1 }
 0x328   :  { %v1258_v61 = vmul.f32 -1.442695, %v570_v55  ;;  %v1259_v34 = vmul.f32 -1.442695, %v572_v63 }
 0x329   :  { %1363 = vpow2.f32 %v1257_v58  ;;  %v599_v58 = vld [vmem:[#allocation2 + $0x38] sm:$0xff] }
 0x32a   :  { %1365 = vpow2.f32 %v1258_v61 }
 0x32b   :  { %1367 = vpow2.f32 %v1259_v34 }
 0x32c   :  { %1369 = vtanh.f32 %v571_v36 }
 0x333   :  { %v1364_v37 = vpop.eup %1363 }
 0x334   :  { %v1366_v38 = vpop.eup %1365  ;;  %v576_v39 = vadd.f32 1.0, %v1364_v37 }
 0x335   :  { %v582_v40 = vadd.f32 1.0, %v1366_v38  ;;  %v1368_v41 = vpop.eup %1367  ;;  %v603_v38 = vunpack.c.h.bf16 %v599_v58 }
 0x336   :  { %1371 = vrcp.f32 %v576_v39  ;;  %v1370_v43 = vpop.eup %1369  ;;  %v589_v35 = vadd.f32 1.0, %v1368_v41 }
 0x337   :  { %1373 = vrcp.f32 %v582_v40  ;;  %v602_v40 = vunpack.c.l.bf16 %v599_v58 }
 0x338   :  { %1375 = vrcp.f32 %v589_v35 }
 0x340   :  { %v1372_v44 = vpop.eup %1371 }
 0x341   :  { %v1374_v45 = vpop.eup %1373  ;;  %v593_v46 = vmul.f32 %v1372_v44, %v1370_v43 }
 0x342   :  { %v592_v47 = vmul.f32 %v1374_v45, %v1811_v42  ;;  %v1376_v49 = vpop.eup %1375  ;;  %v598_v42 = vld [vmem:[#allocation2 + $0x30] sm:$0xff] }
 0x343   :  { %v600_v53 = vunpack.c.l.bf16 %v598_v42  ;;  %v601_v54 = vunpack.c.h.bf16 %v598_v42 }
 0x344   :  { %v1849_v48 = vadd.f32 %v593_v46, %v592_v47 }
 0x346   :  { %1377 = vtanh.f32 %v1849_v48 }
 0x350   :  { %v1378_v50 = vpop.eup %1377 }
 0x351   :  { %v596_v51 = vmul.f32 %v1378_v50, %v1376_v49 }
 0x353   :  { %v604_v52 = vpack.c.bf16 %v596_v51, %v596_v51 }
 0x355   :  { %638 = vmatmul.mubr.bf16.vlgmr.msra.gmra.mrb[12].mxu0 %v604_v52  ;;  %679 = vmatmul.mubr.bf16.vlgmr.msra.gmra.mrb[12].mxu1 %v604_v52 }
 0x356   :  { %724 = vmatpush1.bf16.msra.mxu0 %v1643_v2  ;;  %765 = vmatpush1.bf16.msra.mxu1 %v1656_v7 }
 0x357   :  { %725 = vmatprep.subr.bf16.mxu0 %v1646_v3  ;;  %766 = vmatprep.subr.bf16.mxu1 %v1666_v10 }
 0x358   :  { %755 = vmatprep.mubr.bf16.mxu0 %v1591_v0  ;;  %796 = vmatprep.mubr.bf16.mxu1 %v1591_v0 }
 0x35a   :  { %726 = vmatpush1.bf16.msra.mxu0 %v1649_v4  ;;  %767 = vmatpush1.bf16.msra.mxu1 %v1668_v11 }
 0x35b   :  { %727 = vmatprep.subr.bf16.mxu0 %v1652_v5  ;;  %768 = vmatprep.subr.bf16.mxu1 %v1676_v14 }
 0x35e   :  { %728 = vmatpush1.bf16.msra.mxu0 %v1659_v8  ;;  %769 = vmatpush1.bf16.msra.mxu1 %v1680_v15 }
 0x35f   :  { %729 = vmatprep.subr.bf16.mxu0 %v1663_v9  ;;  %770 = vmatprep.subr.bf16.mxu1 %v1683_v16 }
 0x362   :  { %730 = vmatpush1.bf16.msra.mxu0 %v1672_v12  ;;  %771 = vmatpush1.bf16.msra.mxu1 %v1692_v19 }
 0x363   :  { %731 = vmatprep.subr.bf16.mxu0 %v1674_v13  ;;  %772 = vmatprep.subr.bf16.mxu1 %v1695_v20 }
 0x366   :  { %732 = vmatpush1.bf16.msra.mxu0 %v1686_v17  ;;  %773 = vmatpush1.bf16.msra.mxu1 %v1704_v23 }
 0x367   :  { %733 = vmatprep.subr.bf16.mxu0 %v1689_v18  ;;  %774 = vmatprep.subr.bf16.mxu1 %v1707_v24 }
 0x36a   :  { %734 = vmatpush1.bf16.msra.mxu0 %v1698_v21  ;;  %775 = vmatpush1.bf16.msra.mxu1 %v1716_v27 }
 0x36b   :  { %735 = vmatprep.subr.bf16.mxu0 %v1700_v22  ;;  %776 = vmatprep.subr.bf16.mxu1 %v1719_v28 }
 0x36e   :  { %736 = vmatpush1.bf16.msra.mxu0 %v1710_v25  ;;  %777 = vmatpush1.bf16.msra.mxu1 %v1726_v30 }
 0x36f   :  { %737 = vmatprep.subr.bf16.mxu0 %v1713_v26  ;;  %778 = vmatprep.subr.bf16.mxu1 %v1729_v31 }
 0x372   :  { %738 = vmatpush1.bf16.msra.mxu0 %v1722_v29  ;;  %779 = vmatpush1.bf16.msra.mxu1 %v1733_v32 }
 0x373   :  { %841 = vmatprep.subr.bf16.mxu0 %v1641_v1  ;;  %882 = vmatprep.subr.bf16.mxu1 %v1654_v6 }
 0x428   :  { %v639_v55 = vpop.f32.mrb[12].mxu0  ;;  %v680_v56 = vpop.f32.mrb[12].mxu1 }
 0x429   :  { %v687_v57 = vadd.f32 %v639_v55, %v600_v53  ;;  %v641_v59 = vpop.f32.mrb[13].mxu0  ;;  %v682_v60 = vpop.f32.mrb[13].mxu1  ;;  %v689_v43 = vadd.f32 %v680_v56, %v602_v40 }
 0x42a   :  { %v688_v61 = vadd.f32 %v641_v59, %v601_v54  ;;  %v643_v62 = vpop.f32.mrb[14].mxu0  ;;  %v684_v63 = vpop.f32.mrb[14].mxu1  ;;  %v690_v39 = vadd.f32 %v682_v60, %v603_v38 }
 0x42b   :  { %v1260_v33 = vmul.f32 -1.442695, %v687_v57  ;;  %v644_v34 = vpop.f32.mrb[15].mxu0  ;;  %v685_v36 = vpop.f32.mrb[15].mxu1 }
 0x42c   :  { %v1261_v37 = vmul.f32 -1.442695, %v688_v61  ;;  %v1262_v41 = vmul.f32 -1.442695, %v690_v39 }
 0x42d   :  { %1379 = vpow2.f32 %v1260_v33  ;;  %v717_v33 = vld [vmem:[#allocation2 + $0x48] sm:$0xff] }
 0x42e   :  { %1381 = vpow2.f32 %v1261_v37 }
 0x42f   :  { %1383 = vpow2.f32 %v1262_v41 }
 0x430   :  { %1385 = vtanh.f32 %v689_v43 }
 0x437   :  { %v1380_v44 = vpop.eup %1379 }
 0x438   :  { %v1382_v45 = vpop.eup %1381  ;;  %v694_v46 = vadd.f32 1.0, %v1380_v44 }
 0x439   :  { %v700_v35 = vadd.f32 1.0, %v1382_v45  ;;  %v1384_v47 = vpop.eup %1383  ;;  %v721_v45 = vunpack.c.h.bf16 %v717_v33 }
 0x43a   :  { %1387 = vrcp.f32 %v694_v46  ;;  %v1386_v49 = vpop.eup %1385  ;;  %v707_v42 = vadd.f32 1.0, %v1384_v47 }
 0x43b   :  { %1389 = vrcp.f32 %v700_v35 }
 0x43c   :  { %1391 = vrcp.f32 %v707_v42 }
 0x444   :  { %v1388_v50 = vpop.eup %1387 }
 0x445   :  { %v1390_v51 = vpop.eup %1389  ;;  %v711_v52 = vmul.f32 %v1388_v50, %v1386_v49 }
 0x446   :  { %v710_v53 = vmul.f32 %v1390_v51, %v1849_v48  ;;  %v1392_v55 = vpop.eup %1391  ;;  %v716_v48 = vld [vmem:[#allocation2 + $0x40] sm:$0xff] }
 0x447   :  { %v718_v59 = vunpack.c.l.bf16 %v716_v48  ;;  %v719_v60 = vunpack.c.h.bf16 %v716_v48 }
 0x448   :  { %v1887_v54 = vadd.f32 %v711_v52, %v710_v53 }
 0x44a   :  { %1393 = vtanh.f32 %v1887_v54 }
 0x454   :  { %v1394_v56 = vpop.eup %1393 }
 0x455   :  { %v714_v57 = vmul.f32 %v1394_v56, %v1392_v55 }
 0x457   :  { %v722_v58 = vpack.c.bf16 %v714_v57, %v714_v57 }
 0x459   :  { %756 = vmatmul.mubr.bf16.vlgmr.msra.gmra.mrb[16].mxu0 %v722_v58  ;;  %797 = vmatmul.mubr.bf16.vlgmr.msra.gmra.mrb[16].mxu1 %v722_v58 }
 0x45a   :  { %842 = vmatpush1.bf16.msra.mxu0 %v1643_v2  ;;  %883 = vmatpush1.bf16.msra.mxu1 %v1656_v7 }
 0x45b   :  { %843 = vmatprep.subr.bf16.mxu0 %v1646_v3  ;;  %884 = vmatprep.subr.bf16.mxu1 %v1666_v10 }
 0x45c   :  { %873 = vmatprep.mubr.bf16.mxu0 %v1591_v0  ;;  %914 = vmatprep.mubr.bf16.mxu1 %v1591_v0 }
 0x45e   :  { %844 = vmatpush1.bf16.msra.mxu0 %v1649_v4  ;;  %885 = vmatpush1.bf16.msra.mxu1 %v1668_v11 }
 0x45f   :  { %845 = vmatprep.subr.bf16.mxu0 %v1652_v5  ;;  %886 = vmatprep.subr.bf16.mxu1 %v1676_v14 }
 0x462   :  { %846 = vmatpush1.bf16.msra.mxu0 %v1659_v8  ;;  %887 = vmatpush1.bf16.msra.mxu1 %v1680_v15 }
 0x463   :  { %847 = vmatprep.subr.bf16.mxu0 %v1663_v9  ;;  %888 = vmatprep.subr.bf16.mxu1 %v1683_v16 }
 0x466   :  { %848 = vmatpush1.bf16.msra.mxu0 %v1672_v12  ;;  %889 = vmatpush1.bf16.msra.mxu1 %v1692_v19 }
 0x467   :  { %849 = vmatprep.subr.bf16.mxu0 %v1674_v13  ;;  %890 = vmatprep.subr.bf16.mxu1 %v1695_v20 }
 0x46a   :  { %850 = vmatpush1.bf16.msra.mxu0 %v1686_v17  ;;  %891 = vmatpush1.bf16.msra.mxu1 %v1704_v23 }
 0x46b   :  { %851 = vmatprep.subr.bf16.mxu0 %v1689_v18  ;;  %892 = vmatprep.subr.bf16.mxu1 %v1707_v24 }
 0x46e   :  { %852 = vmatpush1.bf16.msra.mxu0 %v1698_v21  ;;  %893 = vmatpush1.bf16.msra.mxu1 %v1716_v27 }
 0x46f   :  { %853 = vmatprep.subr.bf16.mxu0 %v1700_v22  ;;  %894 = vmatprep.subr.bf16.mxu1 %v1719_v28 }
 0x472   :  { %854 = vmatpush1.bf16.msra.mxu0 %v1710_v25  ;;  %895 = vmatpush1.bf16.msra.mxu1 %v1726_v30 }
 0x473   :  { %855 = vmatprep.subr.bf16.mxu0 %v1713_v26  ;;  %896 = vmatprep.subr.bf16.mxu1 %v1729_v31 }
 0x476   :  { %856 = vmatpush1.bf16.msra.mxu0 %v1722_v29  ;;  %897 = vmatpush1.bf16.msra.mxu1 %v1733_v32 }
 0x477   :  { %959 = vmatprep.subr.bf16.mxu0 %v1641_v1  ;;  %1000 = vmatprep.subr.bf16.mxu1 %v1654_v6  ;;  %v720_v6 = vunpack.c.l.bf16 %v717_v33 }
 0x52c   :  { %v757_v61 = vpop.f32.mrb[16].mxu0  ;;  %v798_v62 = vpop.f32.mrb[16].mxu1 }
 0x52d   :  { %v805_v63 = vadd.f32 %v757_v61, %v718_v59  ;;  %v759_v34 = vpop.f32.mrb[17].mxu0  ;;  %v800_v36 = vpop.f32.mrb[17].mxu1  ;;  %v807_v35 = vadd.f32 %v798_v62, %v720_v6  ;;  %v1466_v6 = vld [vmem:[#allocation5 + $0x28] ss:$16 sps:$4 sm:$0xff]  }
 0x52e   :  { %v806_v37 = vadd.f32 %v759_v34, %v719_v60  ;;  %v761_v38 = vpop.f32.mrb[18].mxu0  ;;  %v802_v39 = vpop.f32.mrb[18].mxu1  ;;  %v808_v1 = vadd.f32 %v800_v36, %v721_v45  ;;  %v1464_v45 = vld [vmem:[#allocation5 + $0x2c] ss:$16 sps:$4 sm:$0xff]  }
 0x52f   :  { %v1263_v40 = vmul.f32 -1.442695, %v805_v63  ;;  %v762_v41 = vpop.f32.mrb[19].mxu0  ;;  %v803_v43 = vpop.f32.mrb[19].mxu1 }
 0x530   :  { %v1264_v44 = vmul.f32 -1.442695, %v806_v37  ;;  %v1265_v46 = vmul.f32 -1.442695, %v808_v1  ;;  %v1461_v41 = vld [vmem:[#allocation5] ss:$16 sps:$4 sm:$0xff]  }
 0x531   :  { %1395 = vpow2.f32 %v1263_v40  ;;  %v1462_v43 = vld [vmem:[#allocation5 + $0x8] ss:$16 sps:$4 sm:$0xff]   ;;  %v1465_v1 = vld [vmem:[#allocation5 + $0x20] ss:$16 sps:$4 sm:$0xff]  }
 0x532   :  { %1397 = vpow2.f32 %v1264_v44  ;;  %v1463_v44 = vld [vmem:[#allocation5 + $0x24] ss:$16 sps:$4 sm:$0xff]  }
 0x533   :  { %1399 = vpow2.f32 %v1265_v46  ;;  %v1467_v46 = vld [vmem:[#allocation5 + $0x44] ss:$16 sps:$4 sm:$0xff]  }
 0x534   :  { %1401 = vtanh.f32 %v807_v35  ;;  %v1468_v35 = vld [vmem:[#allocation5 + $0x4c] ss:$16 sps:$4 sm:$0xff]  }
 0x53b   :  { %v1396_v47 = vpop.eup %1395 }
 0x53c   :  { %v1398_v49 = vpop.eup %1397  ;;  %v812_v50 = vadd.f32 1.0, %v1396_v47  ;;  %v1469_v47 = vld [vmem:[#allocation5 + $0x40] ss:$16 sps:$4 sm:$0xff]  }
 0x53d   :  { %v818_v51 = vadd.f32 1.0, %v1398_v49  ;;  %v1400_v52 = vpop.eup %1399  ;;  %v1470_v49 = vld [vmem:[#allocation5 + $0x48] ss:$16 sps:$4 sm:$0xff]  }
 0x53e   :  { %1403 = vrcp.f32 %v812_v50  ;;  %v1402_v42 = vpop.eup %1401  ;;  %v825_v57 = vadd.f32 1.0, %v1400_v52  ;;  %v1471_v50 = vld [vmem:[#allocation5 + $0x64] ss:$16 sps:$4 sm:$0xff]   ;;  %v1473_v52 = vld [vmem:[#allocation5 + $0x60] ss:$16 sps:$4 sm:$0xff]  }
 0x53f   :  { %1405 = vrcp.f32 %v818_v51  ;;  %v1472_v51 = vld [vmem:[#allocation5 + $0x6c] ss:$16 sps:$4 sm:$0xff]  }
 0x540   :  { %1407 = vrcp.f32 %v825_v57  ;;  %v1479_v57 = vld [vmem:[#allocation5 + $0xa4] ss:$16 sps:$4 sm:$0xff]  }
 0x548   :  { %v1404_v53 = vpop.eup %1403 }
 0x549   :  { %v1406_v55 = vpop.eup %1405  ;;  %v829_v56 = vmul.f32 %v1404_v53, %v1402_v42  ;;  %v1474_v42 = vld [vmem:[#allocation5 + $0x68] ss:$16 sps:$4 sm:$0xff]   ;;  %v1476_v53 = vld [vmem:[#allocation5 + $0x8c] ss:$16 sps:$4 sm:$0xff]  }
 0x54a   :  { %v828_v58 = vmul.f32 %v1406_v55, %v1887_v54  ;;  %v1408_v59 = vpop.eup %1407  ;;  %v1477_v55 = vld [vmem:[#allocation5 + $0x80] ss:$16 sps:$4 sm:$0xff]  }
 0x54c   :  { %v1925_v48 = vadd.f32 %v829_v56, %v828_v58  ;;  %v1478_v56 = vld [vmem:[#allocation5 + $0x88] ss:$16 sps:$4 sm:$0xff]   ;;  %v1480_v58 = vld [vmem:[#allocation5 + $0xac] ss:$16 sps:$4 sm:$0xff]  }
 0x54e   :  { %1409 = vtanh.f32 %v1925_v48 }
 0x558   :  { %v1410_v60 = vpop.eup %1409 }
 0x559   :  { %v832_v61 = vmul.f32 %v1410_v60, %v1408_v59  ;;  %v1482_v59 = vld [vmem:[#allocation5 + $0xa8] ss:$16 sps:$4 sm:$0xff]   ;;  %v1483_v60 = vld [vmem:[#allocation5 + $0xc4] ss:$16 sps:$4 sm:$0xff]  }
 0x55b   :  { %v840_v62 = vpack.c.bf16 %v832_v61, %v832_v61  ;;  %v1484_v61 = vld [vmem:[#allocation5 + $0xcc] ss:$16 sps:$4 sm:$0xff]  }
 0x55d   :  { %874 = vmatmul.mubr.bf16.vlgmr.msra.gmra.mrb[20].mxu0 %v840_v62  ;;  %915 = vmatmul.mubr.bf16.vlgmr.msra.gmra.mrb[20].mxu1 %v840_v62  ;;  %v1485_v62 = vld [vmem:[#allocation5 + $0xc0] ss:$16 sps:$4 sm:$0xff]  }
 0x55e   :  { %960 = vmatpush1.bf16.msra.mxu0 %v1643_v2  ;;  %1001 = vmatpush1.bf16.msra.mxu1 %v1656_v7  ;;  %v1459_v2 = vld [vmem:[#allocation5 + $0x4] ss:$16 sps:$4 sm:$0xff]  }
 0x55f   :  { %961 = vmatprep.subr.bf16.mxu0 %v1646_v3  ;;  %1002 = vmatprep.subr.bf16.mxu1 %v1666_v10  ;;  %v1460_v3 = vld [vmem:[#allocation5 + $0xc] ss:$16 sps:$4 sm:$0xff]  }
 0x560   :  { %991 = vmatprep.mubr.bf16.mxu0 %v1591_v0  ;;  %1032 = vmatprep.mubr.bf16.mxu1 %v1591_v0 }
 0x562   :  { %962 = vmatpush1.bf16.msra.mxu0 %v1649_v4  ;;  %1003 = vmatpush1.bf16.msra.mxu1 %v1668_v11  ;;  %v834_v4 = vld [vmem:[#allocation2 + $0x50] sm:$0xff]  ;;  %v835_v11 = vld [vmem:[#allocation2 + $0x58] sm:$0xff] }
 0x563   :  { %963 = vmatprep.subr.bf16.mxu0 %v1652_v5  ;;  %1004 = vmatprep.subr.bf16.mxu1 %v1676_v14  ;;  %v836_v5 = vunpack.c.l.bf16 %v834_v4  ;;  %v837_v7 = vunpack.c.h.bf16 %v834_v4  ;;  %v1488_v4 = vld [vmem:[#allocation5 + $0xec] ss:$16 sps:$4 sm:$0xff]  }
 0x566   :  { %964 = vmatpush1.bf16.msra.mxu0 %v1659_v8  ;;  %1005 = vmatpush1.bf16.msra.mxu1 %v1680_v15 }
 0x567   :  { %965 = vmatprep.subr.bf16.mxu0 %v1663_v9  ;;  %1006 = vmatprep.subr.bf16.mxu1 %v1683_v16 }
 0x56a   :  { %966 = vmatpush1.bf16.msra.mxu0 %v1672_v12  ;;  %1007 = vmatpush1.bf16.msra.mxu1 %v1692_v19 }
 0x56b   :  { %967 = vmatprep.subr.bf16.mxu0 %v1674_v13  ;;  %1008 = vmatprep.subr.bf16.mxu1 %v1695_v20 }
 0x56e   :  { %968 = vmatpush1.bf16.msra.mxu0 %v1686_v17  ;;  %1009 = vmatpush1.bf16.msra.mxu1 %v1704_v23  ;;  %v838_v23 = vunpack.c.l.bf16 %v835_v11 }
 0x56f   :  { %969 = vmatprep.subr.bf16.mxu0 %v1689_v18  ;;  %1010 = vmatprep.subr.bf16.mxu1 %v1707_v24 }
 0x572   :  { %970 = vmatpush1.bf16.msra.mxu0 %v1698_v21  ;;  %1011 = vmatpush1.bf16.msra.mxu1 %v1716_v27  ;;  %v839_v21 = vunpack.c.h.bf16 %v835_v11 }
 0x573   :  { %971 = vmatprep.subr.bf16.mxu0 %v1700_v22  ;;  %1012 = vmatprep.subr.bf16.mxu1 %v1719_v28 }
 0x576   :  { %972 = vmatpush1.bf16.msra.mxu0 %v1710_v25  ;;  %1013 = vmatpush1.bf16.msra.mxu1 %v1726_v30 }
 0x577   :  { %973 = vmatprep.subr.bf16.mxu0 %v1713_v26  ;;  %1014 = vmatprep.subr.bf16.mxu1 %v1729_v31 }
 0x57a   :  { %974 = vmatpush1.bf16.msra.mxu0 %v1722_v29  ;;  %1015 = vmatpush1.bf16.msra.mxu1 %v1733_v32 }
 0x57b   :  { %1077 = vmatprep.subr.bf16.mxu0 %v1459_v2  ;;  %1118 = vmatprep.subr.bf16.mxu1 %v1460_v3  ;;  %v1486_v2 = vld [vmem:[#allocation5 + $0xc8] ss:$16 sps:$4 sm:$0xff]   ;;  %v1487_v3 = vld [vmem:[#allocation5 + $0xe4] ss:$16 sps:$4 sm:$0xff]  }
 0x630   :  { %v875_v8 = vpop.f32.mrb[20].mxu0  ;;  %v916_v9 = vpop.f32.mrb[20].mxu1 }
 0x631   :  { %v923_v10 = vadd.f32 %v875_v8, %v836_v5  ;;  %v877_v12 = vpop.f32.mrb[21].mxu0  ;;  %v918_v13 = vpop.f32.mrb[21].mxu1  ;;  %v925_v25 = vadd.f32 %v916_v9, %v838_v23  ;;  %v1489_v5 = vld [vmem:[#allocation5 + $0xe0] ss:$16 sps:$4 sm:$0xff]  }
 0x632   :  { %v924_v14 = vadd.f32 %v877_v12, %v837_v7  ;;  %v879_v15 = vpop.f32.mrb[22].mxu0  ;;  %v920_v16 = vpop.f32.mrb[22].mxu1  ;;  %v926_v22 = vadd.f32 %v918_v13, %v839_v21  ;;  %v1490_v7 = vld [vmem:[#allocation5 + $0xe8] ss:$16 sps:$4 sm:$0xff]   ;;  %v952_v8 = vld [vmem:[#allocation2 + $0x60] sm:$0xff] }
 0x633   :  { %v1266_v17 = vmul.f32 -1.442695, %v923_v10  ;;  %v880_v18 = vpop.f32.mrb[23].mxu0  ;;  %v921_v19 = vpop.f32.mrb[23].mxu1  ;;  %v954_v9 = vunpack.c.l.bf16 %v952_v8  ;;  %v955_v10 = vunpack.c.h.bf16 %v952_v8 }
 0x634   :  { %v1267_v20 = vmul.f32 -1.442695, %v924_v14  ;;  %v1268_v24 = vmul.f32 -1.442695, %v926_v22  ;;  %v953_v14 = vld [vmem:[#allocation2 + $0x68] sm:$0xff] }
 0x635   :  { %1411 = vpow2.f32 %v1266_v17 }
 0x636   :  { %1413 = vpow2.f32 %v1267_v20 }
 0x637   :  { %1415 = vpow2.f32 %v1268_v24  ;;  %v957_v24 = vunpack.c.h.bf16 %v953_v14 }
 0x638   :  { %1417 = vtanh.f32 %v925_v25 }
 0x63f   :  { %v1412_v26 = vpop.eup %1411 }
 0x640   :  { %v1414_v27 = vpop.eup %1413  ;;  %v930_v28 = vadd.f32 1.0, %v1412_v26  ;;  %v956_v26 = vunpack.c.l.bf16 %v953_v14 }
 0x641   :  { %v936_v29 = vadd.f32 1.0, %v1414_v27  ;;  %v1416_v30 = vpop.eup %1415 }
 0x642   :  { %1419 = vrcp.f32 %v930_v28  ;;  %v1418_v31 = vpop.eup %1417  ;;  %v943_v33 = vadd.f32 1.0, %v1416_v30 }
 0x643   :  { %1421 = vrcp.f32 %v936_v29 }
 0x644   :  { %1423 = vrcp.f32 %v943_v33 }
 0x64c   :  { %v1420_v32 = vpop.eup %1419 }
 0x64d   :  { %v1422_v54 = vpop.eup %1421  ;;  %v947_v63 = vmul.f32 %v1420_v32, %v1418_v31 }
 0x64e   :  { %v946_v34 = vmul.f32 %v1422_v54, %v1925_v48  ;;  %v1424_v37 = vpop.eup %1423  ;;  %v1481_v48 = vld [vmem:[#allocation5 + $0xa0] ss:$16 sps:$4 sm:$0xff]  }
 0x650   :  { %v1961_v36 = vadd.f32 %v947_v63, %v946_v34 }
 0x652   :  { %1425 = vtanh.f32 %v1961_v36 }
 0x65c   :  { %v1426_v38 = vpop.eup %1425 }
 0x65d   :  { %v950_v39 = vmul.f32 %v1426_v38, %v1424_v37 }
 0x65f   :  { %v958_v40 = vpack.c.bf16 %v950_v39, %v950_v39 }
 0x661   :  { %992 = vmatmul.mubr.bf16.vlgmr.msra.gmra.mrb[24].mxu0 %v958_v40  ;;  %1033 = vmatmul.mubr.bf16.vlgmr.msra.gmra.mrb[24].mxu1 %v958_v40 }
 0x662   :  { %1078 = vmatpush1.bf16.msra.mxu0 %v1461_v41  ;;  %1119 = vmatpush1.bf16.msra.mxu1 %v1462_v43 }
 0x663   :  { %1079 = vmatprep.subr.bf16.mxu0 %v1463_v44  ;;  %1120 = vmatprep.subr.bf16.mxu1 %v1464_v45 }
 0x664   :  { %1109 = vmatprep.mubr.bf16.mxu0 %v1591_v0  ;;  %1150 = vmatprep.mubr.bf16.mxu1 %v1591_v0  ;;  %v1475_v0 = vld [vmem:[#allocation5 + $0x84] ss:$16 sps:$4 sm:$0xff]  }
 0x666   :  { %1080 = vmatpush1.bf16.msra.mxu0 %v1465_v1  ;;  %1121 = vmatpush1.bf16.msra.mxu1 %v1466_v6  ;;  %v1070_v1 = vld [vmem:[#allocation2 + $0x70] sm:$0xff] }
 0x667   :  { %1081 = vmatprep.subr.bf16.mxu0 %v1467_v46  ;;  %1122 = vmatprep.subr.bf16.mxu1 %v1468_v35  ;;  %v1072_v6 = vunpack.c.l.bf16 %v1070_v1  ;;  %v1073_v46 = vunpack.c.h.bf16 %v1070_v1 }
 0x66a   :  { %1082 = vmatpush1.bf16.msra.mxu0 %v1469_v47  ;;  %1123 = vmatpush1.bf16.msra.mxu1 %v1470_v49 }
 0x66b   :  { %1083 = vmatprep.subr.bf16.mxu0 %v1471_v50  ;;  %1124 = vmatprep.subr.bf16.mxu1 %v1472_v51  ;;  %v1071_v50 = vld [vmem:[#allocation2 + $0x78] sm:$0xff] }
 0x66e   :  { %1084 = vmatpush1.bf16.msra.mxu0 %v1473_v52  ;;  %1125 = vmatpush1.bf16.msra.mxu1 %v1474_v42 }
 0x66f   :  { %1085 = vmatprep.subr.bf16.mxu0 %v1475_v0  ;;  %1126 = vmatprep.subr.bf16.mxu1 %v1476_v53 }
 0x672   :  { %1086 = vmatpush1.bf16.msra.mxu0 %v1477_v55  ;;  %1127 = vmatpush1.bf16.msra.mxu1 %v1478_v56 }
 0x673   :  { %1087 = vmatprep.subr.bf16.mxu0 %v1479_v57  ;;  %1128 = vmatprep.subr.bf16.mxu1 %v1480_v58  ;;  %v1075_v58 = vunpack.c.h.bf16 %v1071_v50 }
 0x676   :  { %1088 = vmatpush1.bf16.msra.mxu0 %v1481_v48  ;;  %1129 = vmatpush1.bf16.msra.mxu1 %v1482_v59  ;;  %v1074_v59 = vunpack.c.l.bf16 %v1071_v50 }
 0x677   :  { %1089 = vmatprep.subr.bf16.mxu0 %v1483_v60  ;;  %1130 = vmatprep.subr.bf16.mxu1 %v1484_v61 }
 0x67a   :  { %1090 = vmatpush1.bf16.msra.mxu0 %v1485_v62  ;;  %1131 = vmatpush1.bf16.msra.mxu1 %v1486_v2 }
 0x67b   :  { %1091 = vmatprep.subr.bf16.mxu0 %v1487_v3  ;;  %1132 = vmatprep.subr.bf16.mxu1 %v1488_v4 }
 0x67e   :  { %1092 = vmatpush1.bf16.msra.mxu0 %v1489_v5  ;;  %1133 = vmatpush1.bf16.msra.mxu1 %v1490_v7 }
 0x734   :  { %v993_v11 = vpop.f32.mrb[24].mxu0  ;;  %v1034_v12 = vpop.f32.mrb[24].mxu1 }
 0x735   :  { %v1041_v13 = vadd.f32 %v993_v11, %v954_v9  ;;  %v995_v15 = vpop.f32.mrb[25].mxu0  ;;  %v1036_v16 = vpop.f32.mrb[25].mxu1  ;;  %v1043_v28 = vadd.f32 %v1034_v12, %v956_v26 }
 0x736   :  { %v1042_v17 = vadd.f32 %v995_v15, %v955_v10  ;;  %v997_v18 = vpop.f32.mrb[26].mxu0  ;;  %v1038_v19 = vpop.f32.mrb[26].mxu1  ;;  %v1044_v25 = vadd.f32 %v1036_v16, %v957_v24 }
 0x737   :  { %v1269_v20 = vmul.f32 -1.442695, %v1041_v13  ;;  %v998_v21 = vpop.f32.mrb[27].mxu0  ;;  %v1039_v22 = vpop.f32.mrb[27].mxu1 }
 0x738   :  { %v1270_v23 = vmul.f32 -1.442695, %v1042_v17  ;;  %v1271_v27 = vmul.f32 -1.442695, %v1044_v25 }
 0x739   :  { %1427 = vpow2.f32 %v1269_v20 }
 0x73a   :  { %1429 = vpow2.f32 %v1270_v23 }
 0x73b   :  { %1431 = vpow2.f32 %v1271_v27 }
 0x73c   :  { %1433 = vtanh.f32 %v1043_v28 }
 0x743   :  { %v1428_v29 = vpop.eup %1427 }
 0x744   :  { %v1430_v30 = vpop.eup %1429  ;;  %v1048_v31 = vadd.f32 1.0, %v1428_v29 }
 0x745   :  { %v1054_v32 = vadd.f32 1.0, %v1430_v30  ;;  %v1432_v54 = vpop.eup %1431 }
 0x746   :  { %1435 = vrcp.f32 %v1048_v31  ;;  %v1434_v63 = vpop.eup %1433  ;;  %v1061_v38 = vadd.f32 1.0, %v1432_v54 }
 0x747   :  { %1437 = vrcp.f32 %v1054_v32 }
 0x748   :  { %1439 = vrcp.f32 %v1061_v38 }
 0x750   :  { %v1436_v33 = vpop.eup %1435 }
 0x751   :  { %v1438_v34 = vpop.eup %1437  ;;  %v1065_v37 = vmul.f32 %v1436_v33, %v1434_v63 }
 0x752   :  { %v1064_v39 = vmul.f32 %v1438_v34, %v1961_v36  ;;  %v1440_v41 = vpop.eup %1439 }
 0x754   :  { %v1066_v40 = vadd.f32 %v1065_v37, %v1064_v39 }
 0x756   :  { %1441 = vtanh.f32 %v1066_v40 }
 0x760   :  { %v1442_v43 = vpop.eup %1441 }
 0x761   :  { %v1068_v44 = vmul.f32 %v1442_v43, %v1440_v41 }
 0x763   :  { %v1076_v45 = vpack.c.bf16 %v1068_v44, %v1068_v44 }
 0x765   :  { %1110 = vmatmul.mubr.bf16.vlgmr.msra.gmra.mrb[28].mxu0 %v1076_v45  ;;  %1151 = vmatmul.mubr.bf16.vlgmr.msra.gmra.mrb[28].mxu1 %v1076_v45 }
 0x838   :  { %v1111_v35 = vpop.f32.mrb[28].mxu0  ;;  %v1152_v47 = vpop.f32.mrb[28].mxu1 }
 0x839   :  { %v1159_v49 = vadd.f32 %v1111_v35, %v1072_v6  ;;  %v1113_v51 = vpop.f32.mrb[29].mxu0  ;;  %v1154_v52 = vpop.f32.mrb[29].mxu1  ;;  %v1161_v61 = vadd.f32 %v1152_v47, %v1074_v59 }
 0x83a   :  { %v1160_v42 = vadd.f32 %v1113_v51, %v1073_v46  ;;  %v1115_v36 = vpop.f32.mrb[30].mxu0  ;;  %v1156_v0 = vpop.f32.mrb[30].mxu1  ;;  %v1162_v48 = vadd.f32 %v1154_v52, %v1075_v58 }
 0x83b   :  { %v1272_v53 = vmul.f32 -1.442695, %v1159_v49  ;;  %v1116_v55 = vpop.f32.mrb[31].mxu0  ;;  %v1157_v56 = vpop.f32.mrb[31].mxu1 }
 0x83c   :  { %v1273_v57 = vmul.f32 -1.442695, %v1160_v42  ;;  %v1274_v60 = vmul.f32 -1.442695, %v1162_v48 }
 0x83d   :  { %1443 = vpow2.f32 %v1272_v53 }
 0x83e   :  { %1445 = vpow2.f32 %v1273_v57 }
 0x83f   :  { %1447 = vpow2.f32 %v1274_v60 }
 0x840   :  { %1449 = vtanh.f32 %v1161_v61 }
 0x847   :  { %v1444_v62 = vpop.eup %1443 }
 0x848   :  { %v1446_v2 = vpop.eup %1445  ;;  %v1166_v3 = vadd.f32 1.0, %v1444_v62 }
 0x849   :  { %v1172_v4 = vadd.f32 1.0, %v1446_v2  ;;  %v1448_v5 = vpop.eup %1447 }
 0x84a   :  { %1451 = vrcp.f32 %v1166_v3  ;;  %v1450_v7 = vpop.eup %1449  ;;  %v1179_v11 = vadd.f32 1.0, %v1448_v5 }
 0x84b   :  { %1453 = vrcp.f32 %v1172_v4 }
 0x84c   :  { %1455 = vrcp.f32 %v1179_v11 }
 0x854   :  { %v1452_v8 = vpop.eup %1451 }
 0x855   :  { %v1454_v9 = vpop.eup %1453  ;;  %v1183_v10 = vmul.f32 %v1452_v8, %v1450_v7 }
 0x856   :  { %v1182_v12 = vmul.f32 %v1454_v9, %v1066_v40 }
 0x858   :  { %v1184_v13 = vadd.f32 %v1183_v10, %v1182_v12 }
 0x85a   :  { %1457 = vtanh.f32 %v1184_v13  ;;  %1188 = vst [vmem:[#allocation8] sm:$0xff] %v1184_v13 }
 0x85b   :  { %1546 = shalt.err (!%p1543_p6)
}
 0x85c   :  { %s1547_s14 = scalar_lea.hbm %s1994_s3, 128 }
 0x85d   :  { %p1548_p7 = scmp.ne.s32.totalorder %s1994_s3, %s1547_s14  ;;  %p1551_p8 = scmp.lt.u32.totalorder %s1547_s14, %s1994_s3 }
 0x85f   :  { %p1553_p9 = pnand %p1551_p8, %p1548_p7 }
 0x861   :  { %1556 = shalt.err (!%p1553_p9)
}
 0x862   :  { %1208 = dma.vmem_to_hbm [thread:$0]  %s1206_s10, 128, %s1994_s3, [#allocation9]   ;;  %v1456_v14 = vpop.eup %1455 }
 0x863   :  { %s1594_s21 = smov [#allocation7]  }
 0x864   :  { %s1195_s22 = sshll.u32 %s1594_s21, 4  ;;  %v1458_v15 = vpop.eup %1457  ;;  %s1196_s22 = int_to_ptr.vmem [resolvable:$true] %s1195_s22 }
 0x865   :  { %v1186_v16 = vmul.f32 %v1458_v15, %v1456_v14  ;;  %s1557_s23 = scalar_lea.vmem %s1196_s22, 128  ;;  %p1562_p11 = scmp.lt.s32.totalorder %s1196_s22, %s1196_s22 }
 0x866   :  { %p1558_p10 = scmp.ne.s32.totalorder %s1196_s22, %s1557_s23  ;;  %p1563_p12 = scmp.lt.s32.totalorder %s1557_s23, %s1557_s23 }
 0x867   :  { %1187 = vst [vmem:[#allocation7] sm:$0xff] %v1186_v16 }
 0x868   :  { %p1564_p13 = por %p1563_p12, %p1562_p11 }
 0x86a   :  { %p1565_p0 = pnand %p1564_p13, %p1558_p10 }
 0x86c   :  { %1568 = shalt.err (!%p1565_p0)
}
 0x86d   :  { %s1569_s26 = scalar_lea.hbm %s1993_s2, 128 }
 0x86e   :  { %p1570_p1 = scmp.ne.s32.totalorder %s1993_s2, %s1569_s26  ;;  %p1573_p2 = scmp.lt.u32.totalorder %s1569_s26, %s1993_s2 }
 0x870   :  { %p1575_p3 = pnand %p1573_p2, %p1570_p1 }
 0x872   :  { %1578 = shalt.err (!%p1575_p3)
}
 0x873   :  { %1198 = dma.vmem_to_hbm [thread:$0]  %s1196_s22, 128, %s1993_s2, [#allocation4]  }
 0x874   :  { %1583 = dma.done.wait [#allocation4], 128  }
 0x875   :  { %1584 = vsyncadd [#allocation4], 4294967168 }
 0x876   :  { %1585 = dma.done.wait [#allocation9], 128  }
 0x877   :  { %1586 = vsyncadd [#allocation9], 4294967168 }
 0x878   :  { %1215 = vsyncpa [#allocation3], 1 }
 0x879   :  { %1216 = vsyncpa [#allocation6], 1 }
 0x87a   :  { %1217 = vsyncpa [#allocation4], 1 }
 0x87b   :  { %1218 = vsyncpa [#allocation9], 1 }

</bundles_post_ra>
